<compile_context>
chip_gen: v5e
topology: v5e:2x2
jax: 0.10.0
libtpu: 0.0.40
codegen_flags: <defaults>
</compile_context>

<pallas_src>
import functools

import numpy as np
import jax
import jax.numpy as jnp
from jax.experimental import pallas as pl
from jax.experimental.pallas import tpu as pltpu


# ----------------------------------------------------------------------------
# Fused forward kernel.
#
# Activation layout inside the kernel: (TN*H, W*C) -- rows are (batch, height)
# pairs, columns are (width, channel) with channel minor.  With this layout a
# conv tap at (kh, kw) is: shift rows by kh-1 (roll + mask, zero H padding)
# and the kw/channel mixing is folded into a banded weight matrix, so each
# conv is just 3 MXU matmuls.
# ----------------------------------------------------------------------------
def _fused_kernel(x_ref, w1_ref, b1_ref, w2_ref, b2_ref,
                  fc1w_ref, fc1b_ref, fc2w_ref, fc2b_ref,
                  o_ref, *, H):
    NH = x_ref.shape[0]          # TN * H rows in this batch block
    TN = NH // H

    def shifted(x, dh):
        """y[r] = x[r + dh] within each image; out-of-range H rows -> 0."""
        if dh == 0:
            return x
        # XLU sublane rotation (wrap-around rows are masked out below).
        y = pltpu.roll(x, shift=(-dh) % NH, axis=0)
        h = jax.lax.broadcasted_iota(jnp.int32, x.shape, 0) % H
        valid = (h >= -dh) if dh < 0 else (h < H - dh)
        return jnp.where(valid, y, 0.0)

    def conv_relu(x_f32, w_ref, b_ref):
        acc = None
        for kh in range(3):                       # statically unrolled
            lhs = shifted(x_f32, kh - 1).astype(jnp.bfloat16)
            d = jnp.dot(lhs, w_ref[kh], preferred_element_type=jnp.float32)
            acc = d if acc is None else acc + d
        return jnp.maximum(acc + b_ref[...], 0.0)  # bias + ReLU in f32 (VPU)

    # conv1 + ReLU, conv2 + ReLU  (rows = (n, h), cols = (w, c))
    a1 = conv_relu(x_ref[...].astype(jnp.float32), w1_ref, b1_ref)   # (NH, W*C1)
    a2 = conv_relu(a1, w2_ref, b2_ref)                               # (NH, W*C2)

    # flatten (kernel's (h, w, c) order; fc1 rows pre-permuted on host) + fc1
    flat = a2.reshape(TN, H * a2.shape[-1]).astype(jnp.bfloat16)     # (TN, 4096)
    h1 = jnp.dot(flat, fc1w_ref[...], preferred_element_type=jnp.float32)
    h1 = jnp.maximum(h1 + fc1b_ref[...], 0.0).astype(jnp.bfloat16)   # (TN, HID)

    # fc2 (output padded to 128 lanes on the host -> full-lane store)
    out = jnp.dot(h1, fc2w_ref[...], preferred_element_type=jnp.float32)
    o_ref[...] = (out + fc2b_ref[...]).astype(o_ref.dtype)


# ----------------------------------------------------------------------------
# Host-side parameter plumbing (one-time, outside the hot path).
# ----------------------------------------------------------------------------
def _conv_band(w, W):
    """w: (3, 3, cin, cout) -> (3, W*cin, W*cout) banded matrices.

    band[kh][(wo+kw-1)*cin + ci, wo*cout + co] = w[kh, kw, ci, co]; width taps
    that fall outside [0, W) are dropped == zero-padding along W.
    """
    w = np.asarray(w, dtype=np.float32)
    _, _, cin, cout = w.shape
    band = np.zeros((3, W * cin, W * cout), dtype=np.float32)
    for kh in range(3):
        for kw in range(3):
            for wo in range(W):
                wi = wo + kw - 1
                if 0 <= wi < W:
                    band[kh, wi * cin:(wi + 1) * cin,
                         wo * cout:(wo + 1) * cout] = w[kh, kw]
    return band


def prepare_kernel_params(params, *, H, W):
    C1 = params["conv1_w"].shape[-1]
    C2 = params["conv2_w"].shape[-1]

    fc1_wt = np.asarray(params["fc1_wt"], np.float32)   # rows in torch (c,h,w) order
    HID = fc1_wt.shape[-1]
    # Permute fc1 rows so it consumes the kernel's (h, w, c) flatten order.
    fc1_perm = (fc1_wt.reshape(C2, H, W, HID)
                .transpose(1, 2, 0, 3)
                .reshape(H * W * C2, HID))

    fc2_wt = np.asarray(params["fc2_wt"], np.float32)
    fc2_b = np.asarray(params["fc2_b"], np.float32)
    OUT = fc2_wt.shape[-1]
    OUTP = ((OUT + 127) // 128) * 128                   # pad to full 128 lanes
    fc2_w_pad = np.zeros((HID, OUTP), np.float32)
    fc2_w_pad[:, :OUT] = fc2_wt
    fc2_b_pad = np.zeros((1, OUTP), np.float32)
    fc2_b_pad[0, :OUT] = fc2_b

    return {
        # matmul operands -> bf16; biases stay f32 (VPU adds in f32)
        "w1_band": jnp.asarray(_conv_band(params["conv1_w"], W), jnp.bfloat16),
        "b1_wide": jnp.asarray(np.tile(np.asarray(params["conv1_b"], np.float32), W)
                               .reshape(1, W * C1)),
        "w2_band": jnp.asarray(_conv_band(params["conv2_w"], W), jnp.bfloat16),
        "b2_wide": jnp.asarray(np.tile(np.asarray(params["conv2_b"], np.float32), W)
                               .reshape(1, W * C2)),
        "fc1_w": jnp.asarray(fc1_perm, jnp.bfloat16),
        "fc1_b": jnp.asarray(np.asarray(params["fc1_b"], np.float32).reshape(1, -1)),
        "fc2_w": jnp.asarray(fc2_w_pad, jnp.bfloat16),
        "fc2_b": jnp.asarray(fc2_b_pad),
    }


# ----------------------------------------------------------------------------
# Full Fourier_NN forward: one fused Pallas kernel, batch-parallel grid.
# ----------------------------------------------------------------------------
def fourier_nn_forward(x_nchw, kp, *, out_dim):
    N, Cin, H, W = x_nchw.shape
    WCin = W * Cin
    WC1 = kp["b1_wide"].shape[-1]
    WC2 = kp["b2_wide"].shape[-1]
    HID = kp["fc1_b"].shape[-1]
    OUTP = kp["fc2_b"].shape[-1]

    # Only wrapper-side layout op (tiny): NCHW -> (N*H, W*Cin), channel minor.
    x = jnp.transpose(x_nchw, (0, 2, 3, 1)).reshape(N * H, WCin)

    # Batch tile = whole images per grid step; parallel axis lets v7x's second
    # TensorCore pick up grid steps when N is large.  (Keep sublane-legal
    # tiles: either a multiple of 8 images or the whole batch.)
    if N % 8 == 0:
        tn = next(t for t in (64, 32, 16, 8) if N % t == 0)
    else:
        tn = N
    grid = (N // tn,)

    kernel = functools.partial(_fused_kernel, H=H)
    out = pl.pallas_call(
        kernel,
        out_shape=jax.ShapeDtypeStruct((N, OUTP), x_nchw.dtype),
        grid=grid,
        in_specs=[
            pl.BlockSpec((tn * H, WCin), lambda i: (i, 0)),        # activations
            pl.BlockSpec((3, WCin, WC1), lambda i: (0, 0, 0)),     # weights stay
            pl.BlockSpec((1, WC1), lambda i: (0, 0)),              # VMEM-resident
            pl.BlockSpec((3, WC1, WC2), lambda i: (0, 0, 0)),
            pl.BlockSpec((1, WC2), lambda i: (0, 0)),
            pl.BlockSpec((H * WC2, HID), lambda i: (0, 0)),
            pl.BlockSpec((1, HID), lambda i: (0, 0)),
            pl.BlockSpec((HID, OUTP), lambda i: (0, 0)),
            pl.BlockSpec((1, OUTP), lambda i: (0, 0)),
        ],
        out_specs=pl.BlockSpec((tn, OUTP), lambda i: (i, 0)),
        compiler_params=pltpu.CompilerParams(
            dimension_semantics=("parallel",)),
    )(x, kp["w1_band"], kp["b1_wide"], kp["w2_band"], kp["b2_wide"],
      kp["fc1_w"], kp["fc1_b"], kp["fc2_w"], kp["fc2_b"])

    return out[:, :out_dim]


# ----------------------------------------------------------------------------
# Plain-JAX reference for validation (original PyTorch-style f32 params).
# ----------------------------------------------------------------------------
def reference_forward(x_nchw, params):
    def conv_ref(x, w, b):
        w_oihw = jnp.transpose(w, (3, 2, 0, 1))
        y = jax.lax.conv_general_dilated(
            x, w_oihw, window_strides=(1, 1), padding=((1, 1), (1, 1)),
            dimension_numbers=("NCHW", "OIHW", "NCHW"))
        return jax.nn.relu(y + b[None, :, None, None])

    x = conv_ref(x_nchw, params["conv1_w"], params["conv1_b"])
    x = conv_ref(x, params["conv2_w"], params["conv2_b"])
    x = x.reshape(x.shape[0], -1)                  # PyTorch (C, H, W) flatten
    x = jax.nn.relu(x @ params["fc1_wt"] + params["fc1_b"])
    x = x @ params["fc2_wt"] + params["fc2_b"]
    return x


if __name__ == "__main__":
    key = jax.random.PRNGKey(0)
    kx, k1, k2, k3, k4 = jax.random.split(key, 5)

    N, Cin, H, W = 2, 4, 16, 16
    C1, C2 = 8, 16
    HID, OUT = 32, 10
    FLAT = C2 * H * W

    x = jax.random.normal(kx, (N, Cin, H, W), dtype=jnp.float32)

    params = {
        "conv1_w": 0.1 * jax.random.normal(k1, (3, 3, Cin, C1), jnp.float32),
        "conv1_b": jnp.linspace(-0.1, 0.1, C1, dtype=jnp.float32),
        "conv2_w": 0.1 * jax.random.normal(k2, (3, 3, C1, C2), jnp.float32),
        "conv2_b": jnp.linspace(-0.1, 0.1, C2, dtype=jnp.float32),
        "fc1_wt": 0.02 * jax.random.normal(k3, (FLAT, HID), jnp.float32),
        "fc1_b": jnp.linspace(-0.05, 0.05, HID, dtype=jnp.float32),
        "fc2_wt": 0.1 * jax.random.normal(k4, (HID, OUT), jnp.float32),
        "fc2_b": jnp.linspace(-0.05, 0.05, OUT, dtype=jnp.float32),
    }

    # One-time parameter plumbing (bf16 bands, tiled biases, permuted fc1,
    # lane-padded fc2).
    kparams = prepare_kernel_params(params, H=H, W=W)

    fwd = jax.jit(fourier_nn_forward, static_argnames=("out_dim",))
    out = jax.block_until_ready(fwd(x, kparams, out_dim=OUT))

    ref = reference_forward(x, params)
    assert out.shape == (N, OUT), out.shape
    assert jnp.allclose(out, ref, atol=1e-2, rtol=1e-2), \
        f"max abs diff {jnp.max(jnp.abs(out - ref))}"

    print("KERNEL_OK")
</pallas_src>

<mosaic_0001>
module attributes {stable_mosaic.version = 11 : i64} {
  func.func @_fused_kernel(%arg0: i32, %arg1: memref<32x64xf32, #tpu.memory_space<vmem>>, %arg2: memref<3x64x128xbf16, #tpu.memory_space<vmem>>, %arg3: memref<1x128xf32, #tpu.memory_space<vmem>>, %arg4: memref<3x128x256xbf16, #tpu.memory_space<vmem>>, %arg5: memref<1x256xf32, #tpu.memory_space<vmem>>, %arg6: memref<4096x32xbf16, #tpu.memory_space<vmem>>, %arg7: memref<1x32xf32, #tpu.memory_space<vmem>>, %arg8: memref<32x128xbf16, #tpu.memory_space<vmem>>, %arg9: memref<1x128xf32, #tpu.memory_space<vmem>>, %arg10: memref<2x128xf32, #tpu.memory_space<vmem>>) attributes {dimension_semantics = [#tpu.dimension_semantics<parallel>], iteration_bounds = array<i64: 1>, scalar_prefetch = 0 : i64, scratch_operands = 0 : i64, tpu.core_type = #tpu.core_type<tc>, window_params = [{transform_indices = @transform_0, window_bounds = array<i64: 32, 64>}, {pipeline_mode = #tpu.pipeline_mode<synchronous>, transform_indices = @transform_1, window_bounds = array<i64: 3, 64, 128>}, {pipeline_mode = #tpu.pipeline_mode<synchronous>, transform_indices = @transform_2, window_bounds = array<i64: 1, 128>}, {pipeline_mode = #tpu.pipeline_mode<synchronous>, transform_indices = @transform_3, window_bounds = array<i64: 3, 128, 256>}, {pipeline_mode = #tpu.pipeline_mode<synchronous>, transform_indices = @transform_4, window_bounds = array<i64: 1, 256>}, {pipeline_mode = #tpu.pipeline_mode<synchronous>, transform_indices = @transform_5, window_bounds = array<i64: 4096, 32>}, {pipeline_mode = #tpu.pipeline_mode<synchronous>, transform_indices = @transform_6, window_bounds = array<i64: 1, 32>}, {pipeline_mode = #tpu.pipeline_mode<synchronous>, transform_indices = @transform_7, window_bounds = array<i64: 32, 128>}, {pipeline_mode = #tpu.pipeline_mode<synchronous>, transform_indices = @transform_8, window_bounds = array<i64: 1, 128>}, {transform_indices = @transform_9, window_bounds = array<i64: 2, 128>}]} {
    %c0 = arith.constant 0 : index
    %c0_0 = arith.constant 0 : index
    %0 = vector.load %arg1[%c0, %c0_0] : memref<32x64xf32, #tpu.memory_space<vmem>>, vector<32x64xf32>
    %c1_i32 = arith.constant 1 : i32
    %1 = tpu.dynamic_rotate %0 by %c1_i32 dim 0 : vector<32x64xf32>, i32 -> vector<32x64xf32>
    %2 = tpu.iota {dimensions = array<i32: 0>} : vector<32x64xi32>
    %c16_i32 = arith.constant 16 : i32
    %c0_i32 = arith.constant 0 : i32
    %3 = arith.cmpi eq, %c16_i32, %c0_i32 : i32
    %c1_i32_1 = arith.constant 1 : i32
    %4 = arith.select %3, %c1_i32_1, %c16_i32 : i32
    %5 = vector.broadcast %4 : i32 to vector<32x64xi32>
    %6 = arith.remsi %2, %5 : vector<32x64xi32>
    %c0_i32_2 = arith.constant 0 : i32
    %7 = vector.broadcast %c0_i32_2 : i32 to vector<32x64xi32>
    %8 = arith.cmpi ne, %6, %7 : vector<32x64xi32>
    %c0_i32_3 = arith.constant 0 : i32
    %9 = vector.broadcast %c0_i32_3 : i32 to vector<32x64xi32>
    %10 = arith.cmpi slt, %6, %9 : vector<32x64xi32>
    %c0_i32_4 = arith.constant 0 : i32
    %11 = arith.cmpi slt, %4, %c0_i32_4 : i32
    %12 = vector.broadcast %11 : i1 to vector<32x64xi1>
    %13 = vector.broadcast %12 : vector<32x64xi1> to vector<32x64xi1>
    %14 = arith.xori %10, %13 : vector<32x64xi1>
    %15 = arith.andi %14, %8 : vector<32x64xi1>
    %16 = vector.broadcast %4 : i32 to vector<32x64xi32>
    %17 = arith.addi %6, %16 : vector<32x64xi32>
    %18 = arith.select %15, %17, %6 : vector<32x64xi1>, vector<32x64xi32>
    %c1_i32_5 = arith.constant 1 : i32
    %19 = vector.broadcast %c1_i32_5 : i32 to vector<32x64xi32>
    %20 = arith.cmpi sge, %18, %19 : vector<32x64xi32>
    %cst = arith.constant 0.000000e+00 : f32
    %21 = vector.broadcast %cst : f32 to vector<32x64xf32>
    %22 = arith.select %20, %1, %21 : vector<32x64xi1>, vector<32x64xf32>
    %23 = arith.truncf %22 : vector<32x64xf32> to vector<32x64xbf16>
    %c0_6 = arith.constant 0 : index
    %c0_7 = arith.constant 0 : index
    %c0_8 = arith.constant 0 : index
    %24 = vector.load %arg2[%c0_6, %c0_7, %c0_8] : memref<3x64x128xbf16, #tpu.memory_space<vmem>>, vector<1x64x128xbf16>
    %25 = vector.shape_cast %24 : vector<1x64x128xbf16> to vector<64x128xbf16>
    %cst_9 = arith.constant dense<0.000000e+00> : vector<32x128xf32>
    %26 = tpu.matmul %23, %25, %cst_9 {dimension_numbers = #tpu.dot_dimension_numbers<[1], [0], [0], [1], [0, 0, 1, 1], [], []>} : vector<32x64xbf16>, vector<64x128xbf16>, vector<32x128xf32> -> vector<32x128xf32>
    %27 = arith.truncf %0 : vector<32x64xf32> to vector<32x64xbf16>
    %c1 = arith.constant 1 : index
    %c0_10 = arith.constant 0 : index
    %c0_11 = arith.constant 0 : index
    %28 = vector.load %arg2[%c1, %c0_10, %c0_11] : memref<3x64x128xbf16, #tpu.memory_space<vmem>>, vector<1x64x128xbf16>
    %29 = vector.shape_cast %28 : vector<1x64x128xbf16> to vector<64x128xbf16>
    %cst_12 = arith.constant dense<0.000000e+00> : vector<32x128xf32>
    %30 = tpu.matmul %27, %29, %cst_12 {dimension_numbers = #tpu.dot_dimension_numbers<[1], [0], [0], [1], [0, 0, 1, 1], [], []>} : vector<32x64xbf16>, vector<64x128xbf16>, vector<32x128xf32> -> vector<32x128xf32>
    %31 = arith.addf %26, %30 : vector<32x128xf32>
    %c31_i32 = arith.constant 31 : i32
    %32 = tpu.dynamic_rotate %0 by %c31_i32 dim 0 : vector<32x64xf32>, i32 -> vector<32x64xf32>
    %33 = tpu.iota {dimensions = array<i32: 0>} : vector<32x64xi32>
    %c16_i32_13 = arith.constant 16 : i32
    %c0_i32_14 = arith.constant 0 : i32
    %34 = arith.cmpi eq, %c16_i32_13, %c0_i32_14 : i32
    %c1_i32_15 = arith.constant 1 : i32
    %35 = arith.select %34, %c1_i32_15, %c16_i32_13 : i32
    %36 = vector.broadcast %35 : i32 to vector<32x64xi32>
    %37 = arith.remsi %33, %36 : vector<32x64xi32>
    %c0_i32_16 = arith.constant 0 : i32
    %38 = vector.broadcast %c0_i32_16 : i32 to vector<32x64xi32>
    %39 = arith.cmpi ne, %37, %38 : vector<32x64xi32>
    %c0_i32_17 = arith.constant 0 : i32
    %40 = vector.broadcast %c0_i32_17 : i32 to vector<32x64xi32>
    %41 = arith.cmpi slt, %37, %40 : vector<32x64xi32>
    %c0_i32_18 = arith.constant 0 : i32
    %42 = arith.cmpi slt, %35, %c0_i32_18 : i32
    %43 = vector.broadcast %42 : i1 to vector<32x64xi1>
    %44 = vector.broadcast %43 : vector<32x64xi1> to vector<32x64xi1>
    %45 = arith.xori %41, %44 : vector<32x64xi1>
    %46 = arith.andi %45, %39 : vector<32x64xi1>
    %47 = vector.broadcast %35 : i32 to vector<32x64xi32>
    %48 = arith.addi %37, %47 : vector<32x64xi32>
    %49 = arith.select %46, %48, %37 : vector<32x64xi1>, vector<32x64xi32>
    %c15_i32 = arith.constant 15 : i32
    %50 = vector.broadcast %c15_i32 : i32 to vector<32x64xi32>
    %51 = arith.cmpi slt, %49, %50 : vector<32x64xi32>
    %cst_19 = arith.constant 0.000000e+00 : f32
    %52 = vector.broadcast %cst_19 : f32 to vector<32x64xf32>
    %53 = arith.select %51, %32, %52 : vector<32x64xi1>, vector<32x64xf32>
    %54 = arith.truncf %53 : vector<32x64xf32> to vector<32x64xbf16>
    %c2 = arith.constant 2 : index
    %c0_20 = arith.constant 0 : index
    %c0_21 = arith.constant 0 : index
    %55 = vector.load %arg2[%c2, %c0_20, %c0_21] : memref<3x64x128xbf16, #tpu.memory_space<vmem>>, vector<1x64x128xbf16>
    %56 = vector.shape_cast %55 : vector<1x64x128xbf16> to vector<64x128xbf16>
    %cst_22 = arith.constant dense<0.000000e+00> : vector<32x128xf32>
    %57 = tpu.matmul %54, %56, %cst_22 {dimension_numbers = #tpu.dot_dimension_numbers<[1], [0], [0], [1], [0, 0, 1, 1], [], []>} : vector<32x64xbf16>, vector<64x128xbf16>, vector<32x128xf32> -> vector<32x128xf32>
    %58 = arith.addf %31, %57 : vector<32x128xf32>
    %c0_23 = arith.constant 0 : index
    %c0_24 = arith.constant 0 : index
    %59 = vector.load %arg3[%c0_23, %c0_24] : memref<1x128xf32, #tpu.memory_space<vmem>>, vector<1x128xf32>
    %60 = vector.broadcast %59 : vector<1x128xf32> to vector<32x128xf32>
    %61 = arith.addf %58, %60 : vector<32x128xf32>
    %cst_25 = arith.constant 0.000000e+00 : f32
    %62 = vector.broadcast %cst_25 : f32 to vector<32x128xf32>
    %63 = arith.maximumf %61, %62 : vector<32x128xf32>
    %c1_i32_26 = arith.constant 1 : i32
    %64 = tpu.dynamic_rotate %63 by %c1_i32_26 dim 0 : vector<32x128xf32>, i32 -> vector<32x128xf32>
    %65 = tpu.iota {dimensions = array<i32: 0>} : vector<32x128xi32>
    %c16_i32_27 = arith.constant 16 : i32
    %c0_i32_28 = arith.constant 0 : i32
    %66 = arith.cmpi eq, %c16_i32_27, %c0_i32_28 : i32
    %c1_i32_29 = arith.constant 1 : i32
    %67 = arith.select %66, %c1_i32_29, %c16_i32_27 : i32
    %68 = vector.broadcast %67 : i32 to vector<32x128xi32>
    %69 = arith.remsi %65, %68 : vector<32x128xi32>
    %c0_i32_30 = arith.constant 0 : i32
    %70 = vector.broadcast %c0_i32_30 : i32 to vector<32x128xi32>
    %71 = arith.cmpi ne, %69, %70 : vector<32x128xi32>
    %c0_i32_31 = arith.constant 0 : i32
    %72 = vector.broadcast %c0_i32_31 : i32 to vector<32x128xi32>
    %73 = arith.cmpi slt, %69, %72 : vector<32x128xi32>
    %c0_i32_32 = arith.constant 0 : i32
    %74 = arith.cmpi slt, %67, %c0_i32_32 : i32
    %75 = vector.broadcast %74 : i1 to vector<32x128xi1>
    %76 = vector.broadcast %75 : vector<32x128xi1> to vector<32x128xi1>
    %77 = arith.xori %73, %76 : vector<32x128xi1>
    %78 = arith.andi %77, %71 : vector<32x128xi1>
    %79 = vector.broadcast %67 : i32 to vector<32x128xi32>
    %80 = arith.addi %69, %79 : vector<32x128xi32>
    %81 = arith.select %78, %80, %69 : vector<32x128xi1>, vector<32x128xi32>
    %c1_i32_33 = arith.constant 1 : i32
    %82 = vector.broadcast %c1_i32_33 : i32 to vector<32x128xi32>
    %83 = arith.cmpi sge, %81, %82 : vector<32x128xi32>
    %cst_34 = arith.constant 0.000000e+00 : f32
    %84 = vector.broadcast %cst_34 : f32 to vector<32x128xf32>
    %85 = arith.select %83, %64, %84 : vector<32x128xi1>, vector<32x128xf32>
    %86 = arith.truncf %85 : vector<32x128xf32> to vector<32x128xbf16>
    %c0_35 = arith.constant 0 : index
    %c0_36 = arith.constant 0 : index
    %c0_37 = arith.constant 0 : index
    %87 = vector.load %arg4[%c0_35, %c0_36, %c0_37] : memref<3x128x256xbf16, #tpu.memory_space<vmem>>, vector<1x128x256xbf16>
    %88 = vector.shape_cast %87 : vector<1x128x256xbf16> to vector<128x256xbf16>
    %cst_38 = arith.constant dense<0.000000e+00> : vector<32x256xf32>
    %89 = tpu.matmul %86, %88, %cst_38 {dimension_numbers = #tpu.dot_dimension_numbers<[1], [0], [0], [1], [0, 0, 1, 1], [], []>} : vector<32x128xbf16>, vector<128x256xbf16>, vector<32x256xf32> -> vector<32x256xf32>
    %90 = arith.truncf %63 : vector<32x128xf32> to vector<32x128xbf16>
    %c1_39 = arith.constant 1 : index
    %c0_40 = arith.constant 0 : index
    %c0_41 = arith.constant 0 : index
    %91 = vector.load %arg4[%c1_39, %c0_40, %c0_41] : memref<3x128x256xbf16, #tpu.memory_space<vmem>>, vector<1x128x256xbf16>
    %92 = vector.shape_cast %91 : vector<1x128x256xbf16> to vector<128x256xbf16>
    %cst_42 = arith.constant dense<0.000000e+00> : vector<32x256xf32>
    %93 = tpu.matmul %90, %92, %cst_42 {dimension_numbers = #tpu.dot_dimension_numbers<[1], [0], [0], [1], [0, 0, 1, 1], [], []>} : vector<32x128xbf16>, vector<128x256xbf16>, vector<32x256xf32> -> vector<32x256xf32>
    %94 = arith.addf %89, %93 : vector<32x256xf32>
    %c31_i32_43 = arith.constant 31 : i32
    %95 = tpu.dynamic_rotate %63 by %c31_i32_43 dim 0 : vector<32x128xf32>, i32 -> vector<32x128xf32>
    %96 = tpu.iota {dimensions = array<i32: 0>} : vector<32x128xi32>
    %c16_i32_44 = arith.constant 16 : i32
    %c0_i32_45 = arith.constant 0 : i32
    %97 = arith.cmpi eq, %c16_i32_44, %c0_i32_45 : i32
    %c1_i32_46 = arith.constant 1 : i32
    %98 = arith.select %97, %c1_i32_46, %c16_i32_44 : i32
    %99 = vector.broadcast %98 : i32 to vector<32x128xi32>
    %100 = arith.remsi %96, %99 : vector<32x128xi32>
    %c0_i32_47 = arith.constant 0 : i32
    %101 = vector.broadcast %c0_i32_47 : i32 to vector<32x128xi32>
    %102 = arith.cmpi ne, %100, %101 : vector<32x128xi32>
    %c0_i32_48 = arith.constant 0 : i32
    %103 = vector.broadcast %c0_i32_48 : i32 to vector<32x128xi32>
    %104 = arith.cmpi slt, %100, %103 : vector<32x128xi32>
    %c0_i32_49 = arith.constant 0 : i32
    %105 = arith.cmpi slt, %98, %c0_i32_49 : i32
    %106 = vector.broadcast %105 : i1 to vector<32x128xi1>
    %107 = vector.broadcast %106 : vector<32x128xi1> to vector<32x128xi1>
    %108 = arith.xori %104, %107 : vector<32x128xi1>
    %109 = arith.andi %108, %102 : vector<32x128xi1>
    %110 = vector.broadcast %98 : i32 to vector<32x128xi32>
    %111 = arith.addi %100, %110 : vector<32x128xi32>
    %112 = arith.select %109, %111, %100 : vector<32x128xi1>, vector<32x128xi32>
    %c15_i32_50 = arith.constant 15 : i32
    %113 = vector.broadcast %c15_i32_50 : i32 to vector<32x128xi32>
    %114 = arith.cmpi slt, %112, %113 : vector<32x128xi32>
    %cst_51 = arith.constant 0.000000e+00 : f32
    %115 = vector.broadcast %cst_51 : f32 to vector<32x128xf32>
    %116 = arith.select %114, %95, %115 : vector<32x128xi1>, vector<32x128xf32>
    %117 = arith.truncf %116 : vector<32x128xf32> to vector<32x128xbf16>
    %c2_52 = arith.constant 2 : index
    %c0_53 = arith.constant 0 : index
    %c0_54 = arith.constant 0 : index
    %118 = vector.load %arg4[%c2_52, %c0_53, %c0_54] : memref<3x128x256xbf16, #tpu.memory_space<vmem>>, vector<1x128x256xbf16>
    %119 = vector.shape_cast %118 : vector<1x128x256xbf16> to vector<128x256xbf16>
    %cst_55 = arith.constant dense<0.000000e+00> : vector<32x256xf32>
    %120 = tpu.matmul %117, %119, %cst_55 {dimension_numbers = #tpu.dot_dimension_numbers<[1], [0], [0], [1], [0, 0, 1, 1], [], []>} : vector<32x128xbf16>, vector<128x256xbf16>, vector<32x256xf32> -> vector<32x256xf32>
    %121 = arith.addf %94, %120 : vector<32x256xf32>
    %c0_56 = arith.constant 0 : index
    %c0_57 = arith.constant 0 : index
    %122 = vector.load %arg5[%c0_56, %c0_57] : memref<1x256xf32, #tpu.memory_space<vmem>>, vector<1x256xf32>
    %123 = vector.broadcast %122 : vector<1x256xf32> to vector<32x256xf32>
    %124 = arith.addf %121, %123 : vector<32x256xf32>
    %cst_58 = arith.constant 0.000000e+00 : f32
    %125 = vector.broadcast %cst_58 : f32 to vector<32x256xf32>
    %126 = arith.maximumf %124, %125 : vector<32x256xf32>
    %127 = vector.shape_cast %126 : vector<32x256xf32> to vector<2x4096xf32>
    %128 = arith.truncf %127 : vector<2x4096xf32> to vector<2x4096xbf16>
    %c0_59 = arith.constant 0 : index
    %c0_60 = arith.constant 0 : index
    %129 = vector.load %arg6[%c0_59, %c0_60] : memref<4096x32xbf16, #tpu.memory_space<vmem>>, vector<4096x32xbf16>
    %cst_61 = arith.constant dense<0.000000e+00> : vector<2x32xf32>
    %130 = tpu.matmul %128, %129, %cst_61 {dimension_numbers = #tpu.dot_dimension_numbers<[1], [0], [0], [1], [0, 0, 1, 1], [], []>} : vector<2x4096xbf16>, vector<4096x32xbf16>, vector<2x32xf32> -> vector<2x32xf32>
    %c0_62 = arith.constant 0 : index
    %c0_63 = arith.constant 0 : index
    %131 = vector.load %arg7[%c0_62, %c0_63] : memref<1x32xf32, #tpu.memory_space<vmem>>, vector<1x32xf32>
    %132 = vector.broadcast %131 : vector<1x32xf32> to vector<2x32xf32>
    %133 = arith.addf %130, %132 : vector<2x32xf32>
    %cst_64 = arith.constant 0.000000e+00 : f32
    %134 = vector.broadcast %cst_64 : f32 to vector<2x32xf32>
    %135 = arith.maximumf %133, %134 : vector<2x32xf32>
    %136 = arith.truncf %135 : vector<2x32xf32> to vector<2x32xbf16>
    %c0_65 = arith.constant 0 : index
    %c0_66 = arith.constant 0 : index
    %137 = vector.load %arg8[%c0_65, %c0_66] : memref<32x128xbf16, #tpu.memory_space<vmem>>, vector<32x128xbf16>
    %cst_67 = arith.constant dense<0.000000e+00> : vector<2x128xf32>
    %138 = tpu.matmul %136, %137, %cst_67 {dimension_numbers = #tpu.dot_dimension_numbers<[1], [0], [0], [1], [0, 0, 1, 1], [], []>} : vector<2x32xbf16>, vector<32x128xbf16>, vector<2x128xf32> -> vector<2x128xf32>
    %c0_68 = arith.constant 0 : index
    %c0_69 = arith.constant 0 : index
    %139 = vector.load %arg9[%c0_68, %c0_69] : memref<1x128xf32, #tpu.memory_space<vmem>>, vector<1x128xf32>
    %140 = vector.broadcast %139 : vector<1x128xf32> to vector<2x128xf32>
    %141 = arith.addf %138, %140 : vector<2x128xf32>
    %c0_70 = arith.constant 0 : index
    %c0_71 = arith.constant 0 : index
    %142 = vector.load %arg10[%c0_70, %c0_71] : memref<2x128xf32, #tpu.memory_space<vmem>>, vector<2x128xf32>
    tpu.vector_store %arg10[%c0_70, %c0_71], %141 {strides = array<i32>} : memref<2x128xf32, #tpu.memory_space<vmem>>, vector<2x128xf32>,
    return
  }
  func.func @transform_0(%arg0: i32) -> (i32, i32) {
    %c0_i32 = arith.constant 0 : i32
    %c0_i32_0 = arith.constant 0 : i32
    return %arg0, %c0_i32 : i32, i32
  }
  func.func @transform_1(%arg0: i32) -> (i32, i32, i32) {
    %c0_i32 = arith.constant 0 : i32
    %c0_i32_0 = arith.constant 0 : i32
    %c0_i32_1 = arith.constant 0 : i32
    %c0_i32_2 = arith.constant 0 : i32
    return %c0_i32, %c0_i32_0, %c0_i32_1 : i32, i32, i32
  }
  func.func @transform_2(%arg0: i32) -> (i32, i32) {
    %c0_i32 = arith.constant 0 : i32
    %c0_i32_0 = arith.constant 0 : i32
    %c0_i32_1 = arith.constant 0 : i32
    return %c0_i32, %c0_i32_0 : i32, i32
  }
  func.func @transform_3(%arg0: i32) -> (i32, i32, i32) {
    %c0_i32 = arith.constant 0 : i32
    %c0_i32_0 = arith.constant 0 : i32
    %c0_i32_1 = arith.constant 0 : i32
    %c0_i32_2 = arith.constant 0 : i32
    return %c0_i32, %c0_i32_0, %c0_i32_1 : i32, i32, i32
  }
  func.func @transform_4(%arg0: i32) -> (i32, i32) {
    %c0_i32 = arith.constant 0 : i32
    %c0_i32_0 = arith.constant 0 : i32
    %c0_i32_1 = arith.constant 0 : i32
    return %c0_i32, %c0_i32_0 : i32, i32
  }
  func.func @transform_5(%arg0: i32) -> (i32, i32) {
    %c0_i32 = arith.constant 0 : i32
    %c0_i32_0 = arith.constant 0 : i32
    %c0_i32_1 = arith.constant 0 : i32
    return %c0_i32, %c0_i32_0 : i32, i32
  }
  func.func @transform_6(%arg0: i32) -> (i32, i32) {
    %c0_i32 = arith.constant 0 : i32
    %c0_i32_0 = arith.constant 0 : i32
    %c0_i32_1 = arith.constant 0 : i32
    return %c0_i32, %c0_i32_0 : i32, i32
  }
  func.func @transform_7(%arg0: i32) -> (i32, i32) {
    %c0_i32 = arith.constant 0 : i32
    %c0_i32_0 = arith.constant 0 : i32
    %c0_i32_1 = arith.constant 0 : i32
    return %c0_i32, %c0_i32_0 : i32, i32
  }
  func.func @transform_8(%arg0: i32) -> (i32, i32) {
    %c0_i32 = arith.constant 0 : i32
    %c0_i32_0 = arith.constant 0 : i32
    %c0_i32_1 = arith.constant 0 : i32
    return %c0_i32, %c0_i32_0 : i32, i32
  }
  func.func @transform_9(%arg0: i32) -> (i32, i32) {
    %c0_i32 = arith.constant 0 : i32
    %c0_i32_0 = arith.constant 0 : i32
    return %arg0, %c0_i32 : i32, i32
  }
}

</mosaic_0001>

<bundles_post_ra>
// kernel: fourier_nn_forward.1
= control target key start
LH: loop header
LB: loop body
LE: loop exit
PB: predicated region body
PF: predicated region fallthrough
CT: control target
= control target key end

     0   :  { %v42_v3 = vlaneseq  ;;  %s6608_s0 = inlined_call_operand.vmem [shape: f32[32,64], index: 0, kind: input, shape index: {}]   ;;  %s6609_s1 = inlined_call_operand.vmem [shape: bf16[3,64,128], index: 1, kind: input, shape index: {}]   ;;  %s6610_s2 = inlined_call_operand.vmem [shape: f32[1,128], index: 2, kind: input, shape index: {}]   ;;  %s6611_s3 = inlined_call_operand.vmem [shape: bf16[3,128,256], index: 3, kind: input, shape index: {}]   ;;  %s6612_s4 = inlined_call_operand.vmem [shape: f32[1,256], index: 4, kind: input, shape index: {}]   ;;  %s6613_s5 = inlined_call_operand.vmem [shape: bf16[4096,32], index: 5, kind: input, shape index: {}]   ;;  %s6614_s6 = inlined_call_operand.vmem [shape: f32[1,32], index: 6, kind: input, shape index: {}]   ;;  %s6615_s7 = inlined_call_operand.vmem [shape: bf16[32,128], index: 7, kind: input, shape index: {}]   ;;  %s6616_s8 = inlined_call_operand.vmem [shape: f32[1,128], index: 8, kind: input, shape index: {}]   ;;  %s6617_s9 = inlined_call_operand.hbm [shape: f32[2,128], index: 9, kind: output, shape index: {}]  }
   0x1   :  { %v4845_v0 = vld [vmem:[%s6609_s1 + $0x38] sm:$0xff]  ;;  %v4844_v4 = vld [vmem:[%s6609_s1 + $0x30] sm:$0xff]  ;;  %v5264_v8 = vld [vmem:[%s6608_s0] sm:$0xff] }
   0x2   :  { %v4841_v1 = vld [vmem:[%s6609_s1 + $0x18] sm:$0xff]  ;;  %164 = vmatpush.bf16.msra.mxu0 %v4845_v0  ;;  %v4840_v5 = vld [vmem:[%s6609_s1 + $0x10] sm:$0xff]  ;;  %v5256_v6 = vshrl.u32 %v42_v3, 7  ;;  %v5269_v9 = vld [vmem:[%s6608_s0 + $0x8] sm:$0xff]  ;;  %v38_v13 = vrot.slane %v5264_v8, 7  ;;  %v228_v22 = vrot.slane %v5264_v8, 1 }
   0x3   :  { %v4849_v2 = vld [vmem:[%s6609_s1 + $0x58] sm:$0xff]  ;;  %213 = vmatpush.bf16.msra.mxu1 %v4841_v1  ;;  %v4848_v7 = vld [vmem:[%s6609_s1 + $0x50] sm:$0xff]  ;;  %v4843_v15 = vld [vmem:[%s6609_s1 + $0x28] sm:$0xff]  ;;  %v39_v17 = vrot.slane %v5269_v9, 7  ;;  %v229_v18 = vrot.slane %v5269_v9, 1 }
   0x4   :  { %290 = vmatpush.bf16.msra.mxu2 %v4849_v2  ;;  %v5274_v10 = vld [vmem:[%s6608_s0 + $0x18] sm:$0xff]  ;;  %v56_v11 = vand.u32 15, %v5256_v6  ;;  %v49_v12 = vadd.s32 8, %v5256_v6  ;;  %vm44_vm0 = vcmp.lt.s32.totalorder %v5256_v6, 1  ;;  %v5283_v14 = vld [vmem:[%s6608_s0 + $0x10] sm:$0xff]  ;;  %v4839_v16 = vld [vmem:[%s6609_s1 + $0x8] sm:$0xff] }
   0x5   :  { %v41_v19 = vrot.slane %v5274_v10, 7  ;;  %v4847_v21 = vld [vmem:[%s6609_s1 + $0x48] sm:$0xff]  ;;  %v230_v24 = vrot.slane %v5283_v14, 1  ;;  %vm232_vm2 = vcmp.lt.s32.totalorder %v5256_v6, 7  ;;  %v3631_v27 = vld [vmem:[%s6611_s3 + $0xf0] sm:$0xf]  ;;  %v47_v34 = vsel %vm44_vm0, %v38_v13, %v39_v17 }
   0x6   :  { %165 = vmatpush.bf16.msra.mxu0 %v4844_v4  ;;  %v63_v20 = vand.u32 15, %v49_v12  ;;  %vm5298_vm1 = vcmp.ge.s32.totalorder %v56_v11, 1  ;;  %v4881_v29 = vld [vmem:[%s6611_s3 + $0xf4] sm:$0xf0]  ;;  %v4880_v30 = vld [vmem:[%s6611_s3 + $0xf4] sm:$0xf]  ;;  %v235_v37 = vsel %vm232_vm2, %v228_v22, %v229_v18 }
   0x7   :  { %214 = vmatpush.bf16.msra.mxu1 %v4840_v5  ;;  %v48_v25 = vsel %vm44_vm0, %v41_v19, %v38_v13  ;;  %v234_v28 = vsel %vm232_vm2, %v229_v18, %v230_v24  ;;  %v3633_v31 = vld [vmem:[%s6611_s3 + $0xf8] sm:$0xf0]  ;;  %v4842_v32 = vld [vmem:[%s6609_s1 + $0x20] sm:$0xff]  ;;  %v3632_v40 = vor.u32 %v4881_v29, %v3631_v27  ;;  %v4879_v42 = vld [vmem:[%s6611_s3 + $0xe4] sm:$0xf0] }
   0x8   :  { %291 = vmatpush.bf16.msra.mxu2 %v4848_v7  ;;  %vm5306_vm3 = vcmp.lt.s32.totalorder %v63_v20, 15  ;;  %v4838_v33 = vld [vmem:[%s6609_s1] sm:$0xff]  ;;  %v104_v35 = vsel %vm5298_vm1, %v48_v25, 0.0  ;;  %v3636_v41 = vor.u32 %v4880_v30, %v3633_v31 }
   0x9   :  { %v4846_v36 = vld [vmem:[%s6609_s1 + $0x40] sm:$0xff]  ;;  %v242_v38 = vsel %vm5306_vm3, %v234_v28, 0.0 }
   0xa   :  { %166 = vmatpush.bf16.msra.mxu0 %v4843_v15  ;;  %v3623_v39 = vld [vmem:[%s6611_s3 + $0xe0] sm:$0xf] }
   0xb   :  { %215 = vmatpush.bf16.msra.mxu1 %v4839_v16 }
   0xc   :  { %292 = vmatpush.bf16.msra.mxu2 %v4847_v21 }
   0xd   :  { %14 = vsyncpa [#allocation3], 0  ;;  %v118_v43 = vpack.c.bf16 %v5269_v9, %v5264_v8  ;;  %v108_v44 = vpack.c.bf16 %v47_v34, %v104_v35  ;;  %v4878_v45 = vld [vmem:[%s6611_s3 + $0xe4] sm:$0xf]  ;;  %v3625_v46 = vld [vmem:[%s6611_s3 + $0xe8] sm:$0xf0]  ;;  %v245_v47 = vpack.c.bf16 %v242_v38, %v235_v37  ;;  %450 = vmatpush.bf16.msra.mxu3 %v3632_v40  ;;  %v3624_v49 = vor.u32 %v4879_v42, %v3623_v39 }
   0xe   :  { %167 = vmatpush.bf16.msra.mxu0 %v4842_v32  ;;  %vm153_vm4 = vcmask 523264   ;;  %v50_v48 = vadd.s32 16, %v5256_v6  ;;  %v51_v50 = vadd.s32 24, %v5256_v6  ;;  %v3628_v51 = vor.u32 %v4878_v45, %v3625_v46  ;;  %v3615_v3 = vld [vmem:[%s6611_s3 + $0xd0] sm:$0xf]  ;;  %v4905_v57 = vld [vmem:[%s6613_s5 + $0x38] sm:$0xff] }
   0xf   :  { %216 = vmatpush.bf16.msra.mxu1 %v4838_v33  ;;  %v40_v52 = vrot.slane %v5283_v14, 7  ;;  %v231_v55 = vrot.slane %v5274_v10, 1  ;;  %v119_v0 = vpack.c.bf16 %v5274_v10, %v5283_v14  ;;  %v4877_v4 = vld [vmem:[%s6611_s3 + $0xd4] sm:$0xf0]  ;;  %v4876_v5 = vld [vmem:[%s6611_s3 + $0xd4] sm:$0xf] }
  0x10   :  { %293 = vmatpush.bf16.msra.mxu2 %v4846_v36  ;;  %v70_v53 = vand.u32 15, %v50_v48  ;;  %v77_v54 = vand.u32 15, %v51_v50  ;;  %v3616_v7 = vor.u32 %v4877_v4, %v3615_v3  ;;  %v3617_v8 = vld [vmem:[%s6611_s3 + $0xd8] sm:$0xf0]  ;;  %v3607_v10 = vld [vmem:[%s6611_s3 + $0xc0] sm:$0xf] }
  0x11   :  { %3511 = vmatmul.msk.bf16.vlgmr.msra.gmra.mxu0 %vm153_vm4, %v118_v43  ;;  %451 = vmatpush.bf16.msra.mxu3 %v3624_v49  ;;  %v46_v56 = vsel %vm44_vm0, %v39_v17, %v40_v52  ;;  %v236_v58 = vsel %vm232_vm2, %v231_v55, %v228_v22  ;;  %v45_v60 = vsel %vm44_vm0, %v40_v52, %v41_v19  ;;  %v4875_v11 = vld [vmem:[%s6611_s3 + $0xc4] sm:$0xf0]  ;;  %v4874_v12 = vld [vmem:[%s6611_s3 + $0xc4] sm:$0xf]  ;;  %v3609_v14 = vld [vmem:[%s6611_s3 + $0xc8] sm:$0xf0] }
  0x12   :  { %469 = vmatpush.bf16.msrb.mxu0 %v3636_v41  ;;  %3529 = vmatmul.msk.bf16.vlgmr.msra.gmra.mxu1 %vm153_vm4, %v108_v44  ;;  %vm5364_vm5 = vcmp.ge.s32.totalorder %v70_v53, 1  ;;  %vm5370_vm6 = vcmp.lt.s32.totalorder %v77_v54, 15  ;;  %v233_v62 = vsel %vm232_vm2, %v230_v24, %v231_v55  ;;  %v3620_v9 = vor.u32 %v4876_v5, %v3617_v8  ;;  %v3599_v16 = vld [vmem:[%s6611_s3 + $0xb0] sm:$0xf]  ;;  %v4873_v17 = vld [vmem:[%s6611_s3 + $0xb4] sm:$0xf0] }
  0x13   :  { %3555 = vmatmul.msk.bf16.vlgmr.msra.gmra.mxu2 %vm153_vm4, %v245_v47  ;;  %v106_v61 = vsel %vm5364_vm5, %v46_v56, 0.0  ;;  %v244_v63 = vsel %vm5370_vm6, %v236_v58, 0.0  ;;  %v3608_v13 = vor.u32 %v4875_v11, %v3607_v10  ;;  %v3612_v15 = vor.u32 %v4874_v12, %v3609_v14  ;;  %v4872_v18 = vld [vmem:[%s6611_s3 + $0xb4] sm:$0xf]  ;;  %v3601_v20 = vld [vmem:[%s6611_s3 + $0xb8] sm:$0xf0] }
  0x14   :  { %v109_v1 = vpack.c.bf16 %v45_v60, %v106_v61  ;;  %v246_v2 = vpack.c.bf16 %v244_v63, %v233_v62  ;;  %v3600_v19 = vor.u32 %v4873_v17, %v3599_v16  ;;  %v3604_v21 = vor.u32 %v4872_v18, %v3601_v20  ;;  %v3695_v22 = vld [vmem:[%s6611_s3 + $0x70] sm:$0xf]  ;;  %v4865_v24 = vld [vmem:[%s6611_s3 + $0x74] sm:$0xf0]  ;;  %v4864_v25 = vld [vmem:[%s6611_s3 + $0x74] sm:$0xf] }
  0x15   :  { %452 = vmatpush.bf16.msra.mxu3 %v3616_v7  ;;  %v3696_v27 = vor.u32 %v4865_v24, %v3695_v22  ;;  %v3697_v28 = vld [vmem:[%s6611_s3 + $0x78] sm:$0xf0]  ;;  %v3591_v29 = vld [vmem:[%s6611_s3 + $0xa0] sm:$0xf]  ;;  %v4871_v30 = vld [vmem:[%s6611_s3 + $0xa4] sm:$0xf0] }
  0x16   :  { %470 = vmatpush.bf16.msrb.mxu0 %v3628_v51  ;;  %v3700_v31 = vor.u32 %v4864_v25, %v3697_v28  ;;  %v3592_v32 = vor.u32 %v4871_v30, %v3591_v29  ;;  %v4870_v33 = vld [vmem:[%s6611_s3 + $0xa4] sm:$0xf]  ;;  %v3593_v34 = vld [vmem:[%s6611_s3 + $0xa8] sm:$0xf0]  ;;  %v3687_v36 = vld [vmem:[%s6611_s3 + $0x60] sm:$0xf] }
  0x17   :  { %568 = vmatpush.bf16.msrb.mxu1 %v3696_v27  ;;  %v3596_v35 = vor.u32 %v4870_v33, %v3593_v34  ;;  %v4863_v37 = vld [vmem:[%s6611_s3 + $0x64] sm:$0xf0]  ;;  %v4862_v38 = vld [vmem:[%s6611_s3 + $0x64] sm:$0xf]  ;;  %v3689_v40 = vld [vmem:[%s6611_s3 + $0x68] sm:$0xf0] }
  0x18   :  { %587 = vmatpush.bf16.msrb.mxu2 %v3700_v31  ;;  %v3688_v39 = vor.u32 %v4863_v37, %v3687_v36  ;;  %v3583_v41 = vld [vmem:[%s6611_s3 + $0x90] sm:$0xf]  ;;  %v4869_v42 = vld [vmem:[%s6611_s3 + $0x94] sm:$0xf0]  ;;  %v3692_v43 = vor.u32 %v4862_v38, %v3689_v40  ;;  %v4868_v45 = vld [vmem:[%s6611_s3 + $0x94] sm:$0xf] }
  0x19   :  { %453 = vmatpush.bf16.msra.mxu3 %v3608_v13  ;;  %v3584_v44 = vor.u32 %v4869_v42, %v3583_v41  ;;  %v3585_v46 = vld [vmem:[%s6611_s3 + $0x98] sm:$0xf0]  ;;  %v3679_v48 = vld [vmem:[%s6611_s3 + $0x50] sm:$0xf]  ;;  %v4861_v49 = vld [vmem:[%s6611_s3 + $0x54] sm:$0xf0] }
  0x1a   :  { %471 = vmatpush.bf16.msrb.mxu0 %v3620_v9  ;;  %v3588_v47 = vor.u32 %v4868_v45, %v3585_v46  ;;  %v4860_v50 = vld [vmem:[%s6611_s3 + $0x54] sm:$0xf]  ;;  %v3680_v51 = vor.u32 %v4861_v49, %v3679_v48  ;;  %v3681_v52 = vld [vmem:[%s6611_s3 + $0x58] sm:$0xf0]  ;;  %v3575_v53 = vld [vmem:[%s6611_s3 + $0x80] sm:$0xf] }
  0x1b   :  { %569 = vmatpush.bf16.msrb.mxu1 %v3688_v39  ;;  %v4867_v54 = vld [vmem:[%s6611_s3 + $0x84] sm:$0xf0]  ;;  %v3684_v55 = vor.u32 %v4860_v50, %v3681_v52  ;;  %v4866_v58 = vld [vmem:[%s6611_s3 + $0x84] sm:$0xf]  ;;  %v3577_v60 = vld [vmem:[%s6611_s3 + $0x88] sm:$0xf0] }
  0x1c   :  { %588 = vmatpush.bf16.msrb.mxu2 %v3692_v43  ;;  %v3576_v56 = vor.u32 %v4867_v54, %v3575_v53  ;;  %v3580_v61 = vor.u32 %v4866_v58, %v3577_v60  ;;  %v3671_v62 = vld [vmem:[%s6611_s3 + $0x40] sm:$0xf]  ;;  %v4859_v63 = vld [vmem:[%s6611_s3 + $0x44] sm:$0xf0]  ;;  %v3787_v3 = vld [vmem:[%s6611_s3 + $0x170] sm:$0xf] }
  0x1d   :  { %454 = vmatpush.bf16.msra.mxu3 %v3600_v19  ;;  %v4897_v4 = vld [vmem:[%s6611_s3 + $0x174] sm:$0xf0]  ;;  %v4896_v8 = vld [vmem:[%s6611_s3 + $0x174] sm:$0xf]  ;;  %v3789_v9 = vld [vmem:[%s6611_s3 + $0x178] sm:$0xf0] }
  0x1e   :  { %472 = vmatpush.bf16.msrb.mxu0 %v3612_v15  ;;  %v3788_v7 = vor.u32 %v4897_v4, %v3787_v3  ;;  %v3792_v10 = vor.u32 %v4896_v8, %v3789_v9  ;;  %v3663_v11 = vld [vmem:[%s6611_s3 + $0x30] sm:$0xf]  ;;  %v4857_v12 = vld [vmem:[%s6611_s3 + $0x34] sm:$0xf0]  ;;  %v4856_v13 = vld [vmem:[%s6611_s3 + $0x34] sm:$0xf] }
  0x1f   :  { %570 = vmatpush.bf16.msrb.mxu1 %v3680_v51  ;;  %v3664_v14 = vor.u32 %v4857_v12, %v3663_v11  ;;  %v3665_v15 = vld [vmem:[%s6611_s3 + $0x38] sm:$0xf0]  ;;  %v3779_v16 = vld [vmem:[%s6611_s3 + $0x160] sm:$0xf]  ;;  %v4895_v17 = vld [vmem:[%s6611_s3 + $0x164] sm:$0xf0] }
  0x20   :  { %589 = vmatpush.bf16.msrb.mxu2 %v3684_v55  ;;  %v3668_v18 = vor.u32 %v4856_v13, %v3665_v15  ;;  %v3780_v19 = vor.u32 %v4895_v17, %v3779_v16  ;;  %v4894_v20 = vld [vmem:[%s6611_s3 + $0x164] sm:$0xf]  ;;  %v3655_v24 = vld [vmem:[%s6611_s3 + $0x20] sm:$0xf]  ;;  %v4855_v25 = vld [vmem:[%s6611_s3 + $0x24] sm:$0xf0] }
  0x21   :  { %3512 = vmatmul.msk.bf16.gmra.mxu0 %vm153_vm4, %v119_v0  ;;  %455 = vmatpush.bf16.msra.mxu3 %v3592_v32  ;;  %v4858_v0 = vld [vmem:[%s6611_s3 + $0x44] sm:$0xf]  ;;  %v3656_v28 = vor.u32 %v4855_v25, %v3655_v24  ;;  %v3657_v29 = vld [vmem:[%s6611_s3 + $0x28] sm:$0xf0]  ;;  %v3771_v30 = vld [vmem:[%s6611_s3 + $0x150] sm:$0xf] }
  0x22   :  { %3530 = vmatmul.msk.bf16.gmra.mxu1 %vm153_vm4, %v109_v1  ;;  %473 = vmatpush.bf16.msrb.mxu0 %v3604_v21  ;;  %v3672_v1 = vor.u32 %v4859_v63, %v3671_v62  ;;  %v3781_v21 = vld [vmem:[%s6611_s3 + $0x168] sm:$0xf0]  ;;  %v4854_v27 = vld [vmem:[%s6611_s3 + $0x24] sm:$0xf]  ;;  %v4893_v31 = vld [vmem:[%s6611_s3 + $0x154] sm:$0xf0] }
  0x23   :  { %3556 = vmatmul.msk.bf16.gmra.mxu2 %vm153_vm4, %v246_v2  ;;  %v3673_v2 = vld [vmem:[%s6611_s3 + $0x48] sm:$0xf0]  ;;  %v3784_v22 = vor.u32 %v4894_v20, %v3781_v21  ;;  %v3660_v32 = vor.u32 %v4854_v27, %v3657_v29  ;;  %v3772_v33 = vor.u32 %v4893_v31, %v3771_v30  ;;  %v4892_v34 = vld [vmem:[%s6611_s3 + $0x154] sm:$0xf]  ;;  %v3647_v39 = vld [vmem:[%s6611_s3 + $0x10] sm:$0xf] }
  0x24   :  { %v3676_v5 = vor.u32 %v4858_v0, %v3673_v2  ;;  %571 = vmatpush.bf16.msrb.mxu1 %v3672_v1  ;;  %v4853_v40 = vld [vmem:[%s6611_s3 + $0x14] sm:$0xf0]  ;;  %v4852_v41 = vld [vmem:[%s6611_s3 + $0x14] sm:$0xf]  ;;  %v3649_v43 = vld [vmem:[%s6611_s3 + $0x18] sm:$0xf0] }
  0x25   :  { %456 = vmatpush.bf16.msra.mxu3 %v3584_v44  ;;  %v3648_v42 = vor.u32 %v4853_v40, %v3647_v39  ;;  %v3763_v44 = vld [vmem:[%s6611_s3 + $0x140] sm:$0xf]  ;;  %v4891_v45 = vld [vmem:[%s6611_s3 + $0x144] sm:$0xf0]  ;;  %v3652_v46 = vor.u32 %v4852_v41, %v3649_v43  ;;  %v4890_v48 = vld [vmem:[%s6611_s3 + $0x144] sm:$0xf] }
  0x26   :  { %474 = vmatpush.bf16.msrb.mxu0 %v3596_v35  ;;  %590 = vmatpush.bf16.msrb.mxu2 %v3676_v5  ;;  %v3773_v35 = vld [vmem:[%s6611_s3 + $0x158] sm:$0xf0]  ;;  %v3765_v49 = vld [vmem:[%s6611_s3 + $0x148] sm:$0xf0]  ;;  %v3639_v51 = vld [vmem:[%s6611_s3] sm:$0xf] }
  0x27   :  { %v3776_v38 = vor.u32 %v4892_v34, %v3773_v35  ;;  %v3768_v50 = vor.u32 %v4890_v48, %v3765_v49  ;;  %v4851_v52 = vld [vmem:[%s6611_s3 + $0x4] sm:$0xf0]  ;;  %v4850_v53 = vld [vmem:[%s6611_s3 + $0x4] sm:$0xf]  ;;  %v3641_v55 = vld [vmem:[%s6611_s3 + $0x8] sm:$0xf0] }
  0x28   :  { %572 = vmatpush.bf16.msrb.mxu1 %v3664_v14  ;;  %v3640_v54 = vor.u32 %v4851_v52, %v3639_v51  ;;  %v4889_v58 = vld [vmem:[%s6611_s3 + $0x134] sm:$0xf0]  ;;  %v4888_v63 = vld [vmem:[%s6611_s3 + $0x134] sm:$0xf]  ;;  %v3757_v0 = vld [vmem:[%s6611_s3 + $0x138] sm:$0xf0] }
  0x29   :  { %457 = vmatpush.bf16.msra.mxu3 %v3576_v56  ;;  %v3755_v56 = vld [vmem:[%s6611_s3 + $0x130] sm:$0xf]  ;;  %v3760_v4 = vor.u32 %v4888_v63, %v3757_v0  ;;  %v3747_v5 = vld [vmem:[%s6611_s3 + $0x120] sm:$0xf]  ;;  %v4886_v8 = vld [vmem:[%s6611_s3 + $0x124] sm:$0xf] }
  0x2a   :  { %475 = vmatpush.bf16.msrb.mxu0 %v3588_v47  ;;  %591 = vmatpush.bf16.msrb.mxu2 %v3668_v18  ;;  %v3764_v47 = vor.u32 %v4891_v45, %v3763_v44  ;;  %v3756_v62 = vor.u32 %v4889_v58, %v3755_v56  ;;  %v3739_v11 = vld [vmem:[%s6611_s3 + $0x110] sm:$0xf]  ;;  %v4885_v12 = vld [vmem:[%s6611_s3 + $0x114] sm:$0xf0]  ;;  %v5159_v14 = vld [vmem:[%s6610_s2] ss:$0 sm:$0xff] }
  0x2b   :  { %v4884_v16 = vld [vmem:[%s6611_s3 + $0x114] sm:$0xf]  ;;  %v3741_v17 = vld [vmem:[%s6611_s3 + $0x118] sm:$0xf0]  ;;  %v3740_v18 = vor.u32 %v4885_v12, %v3739_v11  ;;  %v3731_v21 = vld [vmem:[%s6611_s3 + $0x100] sm:$0xf] }
  0x2c   :  { %573 = vmatpush.bf16.msrb.mxu1 %v3656_v28  ;;  %v3744_v20 = vor.u32 %v4884_v16, %v3741_v17  ;;  %v4882_v25 = vld [vmem:[%s6611_s3 + $0x104] sm:$0xf]  ;;  %v3733_v27 = vld [vmem:[%s6611_s3 + $0x108] sm:$0xf0]  ;;  %vm5188_vm7 = vmmov 1   ;;  %v4921_v6 = vld [vmem:[%s6613_s5 + $0xb8] sm:$0xff] }
  0x2d   :  { %717 = vmatpush.bf16.msrb.mxu3 %v3788_v7  ;;  %v4887_v7 = vld [vmem:[%s6611_s3 + $0x124] sm:$0xf0]  ;;  %v3736_v34 = vor.u32 %v4882_v25, %v3733_v27  ;;  %vm3701_vm8 = vmpackc.low %vm5188_vm7, %vm5298_vm1  ;;  %v4929_v59 = vld [vmem:[%s6613_s5 + $0xf8] sm:$0xff]  ;;  %vm797_vm12 = vcmask 1043456   ;;  %vm3453_vm13 = vcmask 261120   ;;  %s3478_s30 = sshll.u32 %s6617_s9, 4  ;;  %s3479_s30 = int_to_ptr.hbm [resolvable:$true] %s3478_s30 }
  0x2e   :  { %476 = vmatpush.bf16.msrb.mxu0 %v3580_v61  ;;  %592 = vmatpush.bf16.msrb.mxu2 %v3660_v32  ;;  %v3644_v61 = vor.u32 %v4850_v53, %v3641_v55  ;;  %v3748_v9 = vor.u32 %v4887_v7, %v3747_v5  ;;  %vm3793_vm9 = vmpackc.low %vm5306_vm3, %vm5188_vm7  ;;  %v4920_v11 = vld [vmem:[%s6613_s5 + $0xb0] sm:$0xff]  ;;  %v4927_v16 = vld [vmem:[%s6613_s5 + $0xe8] sm:$0xff] }
  0x2f   :  { %vm3704_vm10 = vmpackc.low %vm5188_vm7, %vm5364_vm5  ;;  %v4928_v12 = vld [vmem:[%s6613_s5 + $0xf0] sm:$0xff]  ;;  %v4902_v17 = vld [vmem:[%s6613_s5 + $0x20] sm:$0xff] }
  0x30   :  { %574 = vmatpush.bf16.msrb.mxu1 %v3648_v42  ;;  %vm3796_vm11 = vmpackc.low %vm5370_vm6, %vm5188_vm7  ;;  %v4925_v27 = vld [vmem:[%s6613_s5 + $0xd8] sm:$0xff] }
  0x31   :  { %718 = vmatpush.bf16.msrb.mxu3 %v3780_v19 }
  0x32   :  { %736 = vmatpush.bf16.msra.mxu0 %v3792_v10  ;;  %593 = vmatpush.bf16.msrb.mxu2 %v3652_v46  ;;  %v3749_v10 = vld [vmem:[%s6611_s3 + $0x128] sm:$0xf0] }
  0x33   :  { %v3752_v15 = vor.u32 %v4886_v8, %v3749_v10  ;;  %v4913_v8 = vld [vmem:[%s6613_s5 + $0x78] sm:$0xff]  ;;  %v4912_v10 = vld [vmem:[%s6613_s5 + $0x70] sm:$0xff] }
  0x34   :  { %575 = vmatpush.bf16.msrb.mxu1 %v3640_v54 }
  0x35   :  { %719 = vmatpush.bf16.msrb.mxu3 %v3772_v33 }
  0x36   :  { %737 = vmatpush.bf16.msra.mxu0 %v3784_v22  ;;  %594 = vmatpush.bf16.msrb.mxu2 %v3644_v61  ;;  %v4883_v22 = vld [vmem:[%s6611_s3 + $0x104] sm:$0xf0]  ;;  %s5190_s3 = smov [#allocation2]  }
  0x37   :  { %v3732_v32 = vor.u32 %v4883_v22, %v3731_v21  ;;  %v4901_v21 = vld [vmem:[%s6613_s5 + $0x18] sm:$0xff]  ;;  %s3476_s28 = sshll.u32 %s5190_s3, 4  ;;  %s3477_s28 = int_to_ptr.vmem [resolvable:$true] %s3476_s28 }
  0x38   :  { %3015 = vmatpush.bf16.msra.mxu1 %v4905_v57  ;;  %v4909_v22 = vld [vmem:[%s6613_s5 + $0x58] sm:$0xff] }
  0x39   :  { %720 = vmatpush.bf16.msrb.mxu3 %v3764_v47 }
  0x3a   :  { %738 = vmatpush.bf16.msra.mxu0 %v3776_v38  ;;  %3028 = vmatpush.bf16.msra.mxu2 %v4913_v8 }
  0x3d   :  { %721 = vmatpush.bf16.msrb.mxu3 %v3756_v62 }
  0x3e   :  { %739 = vmatpush.bf16.msra.mxu0 %v3768_v50  ;;  %3029 = vmatpush.bf16.msra.mxu2 %v4912_v10 }
  0x41   :  { %722 = vmatpush.bf16.msrb.mxu3 %v3748_v9  ;;  %v4904_v9 = vld [vmem:[%s6613_s5 + $0x30] sm:$0xff] }
  0x42   :  { %740 = vmatpush.bf16.msra.mxu0 %v3760_v4  ;;  %3016 = vmatpush.bf16.msra.mxu1 %v4904_v9  ;;  %v4948_v9 = vld [vmem:[%s6613_s5 + $0x190] sm:$0xff] }
  0x45   :  { %723 = vmatpush.bf16.msrb.mxu3 %v3740_v18  ;;  %v4910_v18 = vld [vmem:[%s6613_s5 + $0x60] sm:$0xff] }
  0x46   :  { %741 = vmatpush.bf16.msra.mxu0 %v3752_v15  ;;  %v4919_v15 = vld [vmem:[%s6613_s5 + $0xa8] sm:$0xff] }
  0x49   :  { %724 = vmatpush.bf16.msrb.mxu3 %v3732_v32 }
  0x4a   :  { %742 = vmatpush.bf16.msra.mxu0 %v3744_v20  ;;  %v4926_v20 = vld [vmem:[%s6613_s5 + $0xe0] sm:$0xff] }
  0x4e   :  { %743 = vmatpush.bf16.msra.mxu0 %v3736_v34  ;;  %v4907_v34 = vld [vmem:[%s6613_s5 + $0x48] sm:$0xff] }
  0x8e   :  { %v169_v36 = vpop.f32.mrf.mxu0 }
  0x8f   :  { %v218_v37 = vpop.f32.mrf.mxu1 }
  0x90   :  { %v219_v1 = vadd.f32 %v218_v37, %v169_v36 }
  0x96   :  { %v295_v60 = vpop.f32.mrf.mxu2  ;;  %v171_v2 = vpop.f32.mrf.mxu0 }
  0x97   :  { %v220_v3 = vpop.f32.mrf.mxu1  ;;  %v305_v13 = vadd.f32 %v295_v60, %v219_v1 }
  0x98   :  { %v221_v19 = vadd.f32 %v220_v3, %v171_v2 }
  0x99   :  { %v313_v28 = vadd.f32 %v5159_v14, %v305_v13  ;;  %v4903_v13 = vld [vmem:[%s6613_s5 + $0x28] sm:$0xff] }
  0x9a   :  { %3017 = vmatpush.bf16.msra.mxu1 %v4903_v13 }
  0x9b   :  { %v317_v35 = vmax.f32 %v313_v28, 0.0  ;;  %v4900_v28 = vld [vmem:[%s6613_s5 + $0x10] sm:$0xff] }
  0x9d   :  { %v321_v51 = vrot.slane %v317_v35, 7  ;;  %v606_v61 = vrot.slane %v317_v35, 1 }
  0x9e   :  { %v297_v24 = vpop.f32.mrf.mxu2  ;;  %v174_v30 = vpop.f32.mrf.mxu0  ;;  %3018 = vmatpush.bf16.msra.mxu1 %v4902_v17 }
  0x9f   :  { %v306_v29 = vadd.f32 %v297_v24, %v221_v19  ;;  %v223_v31 = vpop.f32.mrf.mxu1  ;;  %v4918_v19 = vld [vmem:[%s6613_s5 + $0xa0] sm:$0xff]  ;;  %v4917_v24 = vld [vmem:[%s6613_s5 + $0x98] sm:$0xff] }
  0xa0   :  { %v224_v39 = vadd.f32 %v223_v31, %v174_v30  ;;  %v4916_v30 = vld [vmem:[%s6613_s5 + $0x90] sm:$0xff] }
  0xa1   :  { %v314_v33 = vadd.f32 %v5159_v14, %v306_v29  ;;  %v4908_v29 = vld [vmem:[%s6613_s5 + $0x50] sm:$0xff] }
  0xa2   :  { %3019 = vmatpush.bf16.msra.mxu1 %v4901_v21  ;;  %v4924_v31 = vld [vmem:[%s6613_s5 + $0xd0] sm:$0xff]  ;;  %v5189_v21 = vmov 1935823168  }
  0xa3   :  { %v318_v36 = vmax.f32 %v314_v33, 0.0  ;;  %v4899_v33 = vld [vmem:[%s6613_s5 + $0x8] sm:$0xff] }
  0xa5   :  { %v351_v37 = vpack.c.bf16 %v318_v36, %v317_v35  ;;  %v322_v48 = vrot.slane %v318_v36, 7  ;;  %v607_v60 = vrot.slane %v318_v36, 1  ;;  %v4915_v35 = vld [vmem:[%s6613_s5 + $0x88] sm:$0xff] }
  0xa6   :  { %v300_v38 = vpop.f32.mrf.mxu2  ;;  %v176_v40 = vpop.f32.mrf.mxu0  ;;  %3020 = vmatpush.bf16.msra.mxu1 %v4900_v28 }
  0xa7   :  { %458 = vmatmul.bf16.vlgmr.msra.gmra.mxu3 %v351_v37  ;;  %477 = vmatmul.bf16.vlgmr.msrb.gmra.mxu0 %v351_v37  ;;  %v225_v41 = vpop.f32.mrf.mxu1  ;;  %v307_v42 = vadd.f32 %v300_v38, %v224_v39  ;;  %v327_v54 = vsel %vm44_vm0, %v321_v51, %v322_v48  ;;  %v612_v0 = vsel %vm232_vm2, %v606_v61, %v607_v60  ;;  %v4923_v37 = vld [vmem:[%s6613_s5 + $0xc8] sm:$0xff]  ;;  %v4898_v38 = vld [vmem:[%s6613_s5] sm:$0xff] }
  0xa8   :  { %v226_v43 = vadd.f32 %v225_v41, %v176_v40  ;;  %3041 = vmatpush.bf16.msra.mxu3 %v4921_v6  ;;  %3054 = vmatpush.bf16.msrb.mxu0 %v4929_v59  ;;  %v4906_v39 = vld [vmem:[%s6613_s5 + $0x40] sm:$0xff]  ;;  %v4932_v6 = vld [vmem:[%s6613_s5 + $0x110] sm:$0xff] }
  0xa9   :  { %v315_v45 = vadd.f32 %v5159_v14, %v307_v42  ;;  %v4914_v40 = vld [vmem:[%s6613_s5 + $0x80] sm:$0xff]  ;;  %v4937_v42 = vld [vmem:[%s6613_s5 + $0x138] sm:$0xff]  ;;  %v4940_v59 = vld [vmem:[%s6613_s5 + $0x150] sm:$0xff] }
  0xaa   :  { %3021 = vmatpush.bf16.msra.mxu1 %v4899_v33  ;;  %v4922_v41 = vld [vmem:[%s6613_s5 + $0xc0] sm:$0xff] }
  0xab   :  { %v319_v49 = vmax.f32 %v315_v45, 0.0  ;;  %v4961_v45 = vld [vmem:[%s6613_s5 + $0x1f8] sm:$0xff]  ;;  %v4954_v33 = vld [vmem:[%s6613_s5 + $0x1c0] sm:$0xff] }
  0xac   :  { %3042 = vmatpush.bf16.msra.mxu3 %v4920_v11  ;;  %3055 = vmatpush.bf16.msrb.mxu0 %v4928_v12  ;;  %v4956_v11 = vld [vmem:[%s6613_s5 + $0x1d0] sm:$0xff] }
  0xad   :  { %v608_v58 = vrot.slane %v319_v49, 1  ;;  %v323_v63 = vrot.slane %v319_v49, 7 }
  0xae   :  { %v302_v44 = vpop.f32.mrf.mxu2  ;;  %3022 = vmatpush.bf16.msra.mxu1 %v4898_v38 }
  0xaf   :  { %v308_v46 = vadd.f32 %v302_v44, %v226_v43  ;;  %v611_v62 = vsel %vm232_vm2, %v607_v60, %v608_v58  ;;  %v326_v2 = vsel %vm44_vm0, %v322_v48, %v323_v63  ;;  %v4945_v43 = vld [vmem:[%s6613_s5 + $0x178] sm:$0xff]  ;;  %v4936_v48 = vld [vmem:[%s6613_s5 + $0x130] sm:$0xff]  ;;  %v4934_v60 = vld [vmem:[%s6613_s5 + $0x120] sm:$0xff] }
  0xb0   :  { %v3794_v23 = vpack.c.bf16 %v611_v62, %v612_v0  ;;  %3043 = vmatpush.bf16.msra.mxu3 %v4919_v15  ;;  %3056 = vmatpush.bf16.msrb.mxu0 %v4927_v16  ;;  %v4953_v44 = vld [vmem:[%s6613_s5 + $0x1b8] sm:$0xff]  ;;  %v4950_v62 = vld [vmem:[%s6613_s5 + $0x1a0] sm:$0xff]  ;;  %v4939_v15 = vld [vmem:[%s6613_s5 + $0x148] sm:$0xff] }
  0xb1   :  { %v316_v47 = vadd.f32 %v5159_v14, %v308_v46  ;;  %v4911_v14 = vld [vmem:[%s6613_s5 + $0x68] sm:$0xff]  ;;  %v4958_v0 = vld [vmem:[%s6613_s5 + $0x1e0] sm:$0xff] }
  0xb2   :  { %3030 = vmatpush.bf16.msra.mxu2 %v4911_v14  ;;  %v4931_v14 = vld [vmem:[%s6613_s5 + $0x108] sm:$0xff] }
  0xb3   :  { %v320_v50 = vmax.f32 %v316_v47, 0.0  ;;  %v4947_v16 = vld [vmem:[%s6613_s5 + $0x188] sm:$0xff] }
  0xb4   :  { %3044 = vmatpush.bf16.msra.mxu3 %v4918_v19  ;;  %3057 = vmatpush.bf16.msrb.mxu0 %v4926_v20  ;;  %v4955_v19 = vld [vmem:[%s6613_s5 + $0x1c8] sm:$0xff] }
  0xb5   :  { %v324_v52 = vrot.slane %v320_v50, 7  ;;  %v352_v53 = vpack.c.bf16 %v320_v50, %v319_v49  ;;  %v609_v4 = vrot.slane %v320_v50, 1  ;;  %v4944_v49 = vld [vmem:[%s6613_s5 + $0x170] sm:$0xff] }
  0xb6   :  { %3031 = vmatpush.bf16.msra.mxu2 %v4910_v18  ;;  %v4952_v50 = vld [vmem:[%s6613_s5 + $0x1b0] sm:$0xff] }
  0xb7   :  { %463 = vmatmul.bf16.gmra.mxu3 %v352_v53  ;;  %482 = vmatmul.bf16.gmra.mxu0 %v352_v53  ;;  %v328_v55 = vsel %vm44_vm0, %v324_v52, %v321_v51  ;;  %v325_v1 = vsel %vm44_vm0, %v323_v63, %v324_v52  ;;  %v610_v26 = vsel %vm232_vm2, %v608_v58, %v609_v4  ;;  %v4960_v51 = vld [vmem:[%s6613_s5 + $0x1f0] sm:$0xff]  ;;  %v4935_v52 = vld [vmem:[%s6613_s5 + $0x128] sm:$0xff] }
  0xb8   :  { %v3702_v56 = vpack.c.bf16 %v327_v54, %v328_v55  ;;  %v3705_v3 = vpack.c.bf16 %v325_v1, %v326_v2  ;;  %v613_v5 = vsel %vm232_vm2, %v609_v4, %v606_v61  ;;  %3045 = vmatpush.bf16.msra.mxu3 %v4917_v24  ;;  %3058 = vmatpush.bf16.msrb.mxu0 %v4925_v27  ;;  %v4943_v53 = vld [vmem:[%s6613_s5 + $0x168] sm:$0xff]  ;;  %v4942_v61 = vld [vmem:[%s6613_s5 + $0x160] sm:$0xff]  ;;  %v4933_v1 = vld [vmem:[%s6613_s5 + $0x118] sm:$0xff] }
  0xb9   :  { %v3797_v7 = vpack.c.bf16 %v613_v5, %v610_v26  ;;  %v4951_v54 = vld [vmem:[%s6613_s5 + $0x1a8] sm:$0xff]  ;;  %v4941_v2 = vld [vmem:[%s6613_s5 + $0x158] sm:$0xff] }
  0xba   :  { %3703 = vmatmul.msk.bf16.vlgmr.msrb.gmra.mxu1 %vm3701_vm8, %v3702_v56  ;;  %3709 = vmatmul.msk.bf16.vlgmr.msrb.gmra.mxu2 %vm3701_vm8, %v3702_v56  ;;  %v4959_v55 = vld [vmem:[%s6613_s5 + $0x1e8] sm:$0xff]  ;;  %v4957_v4 = vld [vmem:[%s6613_s5 + $0x1d8] sm:$0xff] }
  0xbb   :  { %3032 = vmatpush.bf16.msra.mxu2 %v4909_v22  ;;  %3067 = vmatpush.bf16.msrb.mxu1 %v4937_v42  ;;  %v819_v22 = vunpack.c.l.s4 %v5189_v21 }
  0xbc   :  { %3046 = vmatpush.bf16.msra.mxu3 %v4916_v30  ;;  %3059 = vmatpush.bf16.msrb.mxu0 %v4924_v31  ;;  %v4938_v30 = vld [vmem:[%s6613_s5 + $0x140] sm:$0xff] }
  0xbd   :  { %v4946_v31 = vld [vmem:[%s6613_s5 + $0x180] sm:$0xff] }
  0xbf   :  { %3033 = vmatpush.bf16.msra.mxu2 %v4908_v29  ;;  %3068 = vmatpush.bf16.msrb.mxu1 %v4936_v48  ;;  %v4930_v29 = vld [vmem:[%s6613_s5 + $0x100] sm:$0xff] }
  0xc0   :  { %3047 = vmatpush.bf16.msra.mxu3 %v4915_v35  ;;  %3060 = vmatpush.bf16.msrb.mxu0 %v4923_v37 }
  0xc3   :  { %3034 = vmatpush.bf16.msra.mxu2 %v4907_v34  ;;  %3069 = vmatpush.bf16.msrb.mxu1 %v4935_v52  ;;  %v5901_v34 = vunpack.c.0.s8 %v819_v22 }
  0xc4   :  { %3048 = vmatpush.bf16.msra.mxu3 %v4914_v40  ;;  %3061 = vmatpush.bf16.msrb.mxu0 %v4922_v41 }
  0xc7   :  { %3795 = vmatmul.msk.bf16.vlgmr.msrb.gmra.mxu3 %vm3793_vm9, %v3794_v23  ;;  %3801 = vmatmul.msk.bf16.vlgmr.msra.gmra.mxu0 %vm3793_vm9, %v3794_v23  ;;  %v763_v23 = vld [vmem:[%s6612_s4] sm:$0x3] }
  0xc8   :  { %3035 = vmatpush.bf16.msra.mxu2 %v4906_v39  ;;  %3093 = vmatpush.bf16.msrb.mxu3 %v4953_v44  ;;  %v5858_v57 = vperm.slane %v763_v23, 1  ;;  %v5883_v18 = vperm.slane %v763_v23, 0 }
  0xc9   :  { %3106 = vmatpush.bf16.msra.mxu0 %v4961_v45  ;;  %3070 = vmatpush.bf16.msrb.mxu1 %v4934_v60 }
  0xca   :  { %3706 = vmatmul.msk.bf16.gmra.mxu1 %vm3704_vm10, %v3705_v3  ;;  %3712 = vmatmul.msk.bf16.gmra.mxu2 %vm3704_vm10, %v3705_v3  ;;  %v4949_v3 = vld [vmem:[%s6613_s5 + $0x198] sm:$0xff] }
  0xcc   :  { %3080 = vmatpush.bf16.msrb.mxu2 %v4945_v43  ;;  %3094 = vmatpush.bf16.msrb.mxu3 %v4952_v50 }
  0xcd   :  { %3107 = vmatpush.bf16.msra.mxu0 %v4960_v51  ;;  %3071 = vmatpush.bf16.msrb.mxu1 %v4933_v1 }
  0xd0   :  { %3081 = vmatpush.bf16.msrb.mxu2 %v4944_v49  ;;  %3095 = vmatpush.bf16.msrb.mxu3 %v4951_v54 }
  0xd1   :  { %3108 = vmatpush.bf16.msra.mxu0 %v4959_v55  ;;  %3072 = vmatpush.bf16.msrb.mxu1 %v4932_v6 }
  0xd4   :  { %3082 = vmatpush.bf16.msrb.mxu2 %v4943_v53  ;;  %3096 = vmatpush.bf16.msrb.mxu3 %v4950_v62 }
  0xd5   :  { %3109 = vmatpush.bf16.msra.mxu0 %v4958_v0  ;;  %3073 = vmatpush.bf16.msrb.mxu1 %v4931_v14  ;;  %v4985_v14 = vld [vmem:[%s6613_s5 + $0x2b8] sm:$0xff] }
  0xd7   :  { %3798 = vmatmul.msk.bf16.gmra.mxu3 %vm3796_vm11, %v3797_v7  ;;  %3804 = vmatmul.msk.bf16.gmra.mxu0 %vm3796_vm11, %v3797_v7 }
  0xd8   :  { %3083 = vmatpush.bf16.msrb.mxu2 %v4942_v61  ;;  %3097 = vmatpush.bf16.msrb.mxu3 %v4949_v3 }
  0xd9   :  { %3110 = vmatpush.bf16.msra.mxu0 %v4957_v4  ;;  %3074 = vmatpush.bf16.msrb.mxu1 %v4930_v29 }
  0xdc   :  { %3084 = vmatpush.bf16.msrb.mxu2 %v4941_v2  ;;  %3098 = vmatpush.bf16.msrb.mxu3 %v4948_v9 }
  0xdd   :  { %3111 = vmatpush.bf16.msra.mxu0 %v4956_v11 }
  0xe0   :  { %3085 = vmatpush.bf16.msrb.mxu2 %v4940_v59  ;;  %3099 = vmatpush.bf16.msrb.mxu3 %v4947_v16 }
  0xe1   :  { %3112 = vmatpush.bf16.msra.mxu0 %v4955_v19 }
  0xe4   :  { %3086 = vmatpush.bf16.msrb.mxu2 %v4939_v15  ;;  %3100 = vmatpush.bf16.msrb.mxu3 %v4946_v31 }
  0xe5   :  { %3113 = vmatpush.bf16.msra.mxu0 %v4954_v33  ;;  %v4976_v33 = vld [vmem:[%s6613_s5 + $0x270] sm:$0xff] }
  0xe8   :  { %3087 = vmatpush.bf16.msrb.mxu2 %v4938_v30 }
 0x124   :  { %v5739_v25 = vpop.f32.mrf.mxu0 }
 0x12a   :  { %v5756_v32 = vpop.f32.mrf.mxu3 }
 0x12c   :  { %v5767_v36 = vpop.f32.mrf.mxu0 }
 0x132   :  { %v5796_v46 = vpop.f32.mrf.mxu3 }
 0x134   :  { %v5798_v47 = vpop.f32.mrf.mxu0 }
 0x137   :  { %v577_v26 = vpop.f32.mrf.mxu1 }
 0x138   :  { %v578_v17 = vadd.f32 %v577_v26, %v5756_v32 }
 0x13a   :  { %v5824_v56 = vpop.f32.mrf.mxu3 }
 0x13c   :  { %v5826_v58 = vpop.f32.mrf.mxu0 }
 0x13d   :  { %v596_v63 = vpop.f32.mrf.mxu2 }
 0x13e   :  { %v597_v7 = vadd.f32 %v596_v63, %v5739_v25 }
 0x13f   :  { %v579_v27 = vpop.f32.mrf.mxu1 }
 0x140   :  { %v580_v1 = vadd.f32 %v579_v27, %v5796_v46  ;;  %v4977_v46 = vld [vmem:[%s6613_s5 + $0x278] sm:$0xff] }
 0x141   :  { %v4993_v27 = vld [vmem:[%s6613_s5 + $0x2f8] sm:$0xff] }
 0x142   :  { %v5855_v5 = vpop.f32.mrf.mxu3 }
 0x144   :  { %v745_v8 = vpop.f32.mrf.mxu0 }
 0x145   :  { %v756_v10 = vadd.f32 %v745_v8, %v597_v7  ;;  %v598_v12 = vpop.f32.mrf.mxu2 }
 0x146   :  { %v599_v62 = vadd.f32 %v598_v12, %v5767_v36 }
 0x147   :  { %v770_v13 = vadd.f32 %v5858_v57, %v756_v10  ;;  %v582_v45 = vpop.f32.mrf.mxu1  ;;  %v4969_v10 = vld [vmem:[%s6613_s5 + $0x238] sm:$0xff] }
 0x148   :  { %v583_v49 = vadd.f32 %v582_v45, %v5824_v56  ;;  %v4983_v45 = vld [vmem:[%s6613_s5 + $0x2a8] sm:$0xff] }
 0x149   :  { %v778_v24 = vmax.f32 %v770_v13, 0.0 }
 0x14a   :  { %v726_v20 = vpop.f32.mrf.mxu3 }
 0x14b   :  { %v755_v25 = vadd.f32 %v726_v20, %v578_v17  ;;  %v793_v35 = vrot.slane %v778_v24, 4 }
 0x14c   :  { %v747_v28 = vpop.f32.mrf.mxu0 }
 0x14d   :  { %v769_v32 = vadd.f32 %v5883_v18, %v755_v25  ;;  %v601_v38 = vpop.f32.mrf.mxu2  ;;  %v758_v2 = vadd.f32 %v747_v28, %v599_v62 }
 0x14e   :  { %v602_v42 = vadd.f32 %v601_v38, %v5798_v47  ;;  %v4992_v38 = vld [vmem:[%s6613_s5 + $0x2f0] sm:$0xff] }
 0x14f   :  { %v777_v37 = vmax.f32 %v769_v32, 0.0  ;;  %v584_v0 = vpop.f32.mrf.mxu1  ;;  %v772_v9 = vadd.f32 %v5858_v57, %v758_v2  ;;  %v4968_v32 = vld [vmem:[%s6613_s5 + $0x230] sm:$0xff] }
 0x150   :  { %v585_v7 = vadd.f32 %v584_v0, %v5855_v5  ;;  %v4982_v0 = vld [vmem:[%s6613_s5 + $0x2a0] sm:$0xff] }
 0x151   :  { %v798_v39 = vsel %vm797_vm12, %v777_v37, %v793_v35  ;;  %v799_v63 = vsel %vm797_vm12, %v793_v35, %v777_v37  ;;  %v780_v30 = vmax.f32 %v772_v9, 0.0  ;;  %v4984_v37 = vld [vmem:[%s6613_s5 + $0x2b0] sm:$0xff] }
 0x152   :  { %v821_v40 = vperm.slane %v798_v39, %v5901_v34  ;;  %v728_v41 = vpop.f32.mrf.mxu3  ;;  %v800_v26 = vrot.slane %v799_v63, 4 }
 0x153   :  { %v757_v6 = vadd.f32 %v728_v41, %v580_v1  ;;  %v794_v39 = vrot.slane %v780_v30, 4  ;;  %v5001_v30 = vld [vmem:[%s6613_s5 + $0x338] sm:$0xff] }
 0x154   :  { %858 = vst [vmem:[#allocation1] ss:$9 sm:$0xff] %v821_v40  ;;  %v750_v43 = vpop.f32.mrf.mxu0 }
 0x155   :  { %v760_v44 = vadd.f32 %v750_v43, %v602_v42  ;;  %v603_v61 = vpop.f32.mrf.mxu2  ;;  %v5930_v15 = vadd.f32 %v5883_v18, %v757_v6  ;;  %v4967_v42 = vld [vmem:[%s6613_s5 + $0x228] sm:$0xff]  ;;  %v4981_v6 = vld [vmem:[%s6613_s5 + $0x298] sm:$0xff] }
 0x156   :  { %v604_v56 = vadd.f32 %v603_v61, %v5826_v58  ;;  %v825_v58 = vperm.slane %v800_v26, %v5901_v34  ;;  %v4975_v43 = vld [vmem:[%s6613_s5 + $0x268] sm:$0xff] }
 0x157   :  { %v774_v48 = vadd.f32 %v5858_v57, %v760_v44 }
 0x159   :  { %v782_v51 = vmax.f32 %v774_v48, 0.0  ;;  %v4991_v48 = vld [vmem:[%s6613_s5 + $0x2e8] sm:$0xff] }
 0x15a   :  { %v731_v50 = vpop.f32.mrf.mxu3 }
 0x15b   :  { %v759_v52 = vadd.f32 %v731_v50, %v583_v49  ;;  %v795_v54 = vrot.slane %v782_v51, 4  ;;  %v4966_v49 = vld [vmem:[%s6613_s5 + $0x220] sm:$0xff] }
 0x15c   :  { %v752_v23 = vpop.f32.mrf.mxu0 }
 0x15d   :  { %v773_v53 = vadd.f32 %v5883_v18, %v759_v52  ;;  %v762_v8 = vadd.f32 %v752_v23, %v604_v56  ;;  %v4990_v23 = vld [vmem:[%s6613_s5 + $0x2e0] sm:$0xff] }
 0x15f   :  { %v781_v55 = vmax.f32 %v773_v53, 0.0  ;;  %v776_v11 = vadd.f32 %v5858_v57, %v762_v8 }
 0x161   :  { %v804_v60 = vsel %vm797_vm12, %v781_v55, %v795_v54  ;;  %v805_v3 = vsel %vm797_vm12, %v795_v54, %v781_v55  ;;  %v784_v31 = vmax.f32 %v776_v11, 0.0  ;;  %v4974_v54 = vld [vmem:[%s6613_s5 + $0x260] sm:$0xff]  ;;  %v4988_v11 = vld [vmem:[%s6613_s5 + $0x2d0] sm:$0xff] }
 0x162   :  { %v837_v47 = vperm.slane %v804_v60, %v5901_v34  ;;  %v733_v4 = vpop.f32.mrf.mxu3  ;;  %v806_v59 = vrot.slane %v805_v3, 4  ;;  %v4965_v3 = vld [vmem:[%s6613_s5 + $0x218] sm:$0xff] }
 0x163   :  { %v761_v36 = vadd.f32 %v733_v4, %v585_v7  ;;  %v796_v40 = vrot.slane %v784_v31, 4  ;;  %v4973_v4 = vld [vmem:[%s6613_s5 + $0x258] sm:$0xff] }
 0x164   :  { %860 = vst [vmem:[#allocation1 + $0x1] ss:$9 sm:$0xff] %v837_v47  ;;  %v841_v57 = vperm.slane %v806_v59, %v5901_v34  ;;  %v4989_v59 = vld [vmem:[%s6613_s5 + $0x2d8] sm:$0xff] }
 0x165   :  { %v5938_v24 = vadd.f32 %v5883_v18, %v761_v36  ;;  %v779_v18 = vmax.f32 %v5930_v15, 0.0  ;;  %v5009_v31 = vld [vmem:[%s6613_s5 + $0x378] sm:$0xff] }
 0x167   :  { %v783_v35 = vmax.f32 %v5938_v24, 0.0  ;;  %v801_v41 = vsel %vm797_vm12, %v779_v18, %v794_v39  ;;  %v802_v56 = vsel %vm797_vm12, %v794_v39, %v779_v18  ;;  %v4979_v24 = vld [vmem:[%s6613_s5 + $0x288] sm:$0xff]  ;;  %v5017_v18 = vld [vmem:[%s6613_s5 + $0x3b8] sm:$0xff] }
 0x168   :  { %v829_v53 = vperm.slane %v801_v41, %v5901_v34  ;;  %v803_v36 = vrot.slane %v802_v56, 4  ;;  %v5016_v41 = vld [vmem:[%s6613_s5 + $0x3b0] sm:$0xff] }
 0x169   :  { %v807_v44 = vsel %vm797_vm12, %v783_v35, %v796_v40  ;;  %v808_v26 = vsel %vm797_vm12, %v796_v40, %v783_v35  ;;  %v5012_v56 = vld [vmem:[%s6613_s5 + $0x390] sm:$0xff] }
 0x16a   :  { %v845_v61 = vperm.slane %v807_v44, %v5901_v34  ;;  %v809_v9 = vrot.slane %v808_v26, 4  ;;  %v833_v15 = vperm.slane %v803_v36, %v5901_v34  ;;  %v5007_v44 = vld [vmem:[%s6613_s5 + $0x368] sm:$0xff]  ;;  %v5033_v36 = vld [vmem:[%s6613_s5 + $0x438] sm:$0xff] }
 0x16b   :  { %v861_v12 = vld [vmem:[#allocation1] sm:$0xff]  ;;  %v862_v5 = vld [vmem:[#allocation1 + $0x9] sm:$0xff]  ;;  %v863_v13 = vld [vmem:[#allocation1 + $0x12] sm:$0xff] }
 0x16c   :  { %v931_v16 = vpack.c.bf16 %v861_v12, %v861_v12  ;;  %v932_v17 = vpack.c.bf16 %v862_v5, %v862_v5  ;;  %v933_v19 = vpack.c.bf16 %v863_v13, %v863_v13  ;;  %v864_v20 = vld [vmem:[#allocation1 + $0x1b] sm:$0xff]  ;;  %v5932_v21 = vld [vmem:[#allocation1 + $0x24] sm:$0xff]  ;;  %v5934_v22 = vld [vmem:[#allocation1 + $0x2d] sm:$0xff] }
 0x16d   :  { %v934_v25 = vpack.c.bf16 %v864_v20, %v864_v20  ;;  %v5943_v28 = vld [vmem:[#allocation1 + $0x36] sm:$0xff]  ;;  %v5945_v29 = vld [vmem:[#allocation1 + $0x3f] sm:$0xff]  ;;  %v935_v1 = vpack.c.bf16 %v5932_v21, %v5932_v21  ;;  %v936_v2 = vpack.c.bf16 %v5934_v22, %v5934_v22  ;;  %v4963_v12 = vld [vmem:[%s6613_s5 + $0x208] sm:$0xff]  ;;  %v849_v20 = vperm.slane %v809_v9, %v5901_v34 }
 0x16e   :  { %3023 = vmatmul.bf16.vlgmr.msra.gmra.mxu1 %v931_v16  ;;  %3036 = vmatmul.bf16.vlgmr.msra.gmra.mxu2 %v932_v17  ;;  %869 = vst [vmem:[#allocation1] ss:$9 sm:$0xff] %v825_v58  ;;  %v937_v7 = vpack.c.bf16 %v5943_v28, %v5943_v28  ;;  %v938_v8 = vpack.c.bf16 %v5945_v29, %v5945_v29  ;;  %v4980_v58 = vld [vmem:[%s6613_s5 + $0x290] sm:$0xff]  ;;  %v4971_v16 = vld [vmem:[%s6613_s5 + $0x248] sm:$0xff]  ;;  %v4962_v34 = vld [vmem:[%s6613_s5 + $0x200] sm:$0xff] }
 0x16f   :  { %3049 = vmatmul.bf16.vlgmr.msra.gmra.mxu3 %v933_v19  ;;  %3062 = vmatmul.bf16.vlgmr.msrb.gmra.mxu0 %v934_v25  ;;  %870 = vst [vmem:[#allocation1 + $0x1] ss:$9 sm:$0xff] %v841_v57  ;;  %v4987_v25 = vld [vmem:[%s6613_s5 + $0x2c8] sm:$0xff]  ;;  %v4978_v28 = vld [vmem:[%s6613_s5 + $0x280] sm:$0xff]  ;;  %v5041_v9 = vld [vmem:[%s6613_s5 + $0x478] sm:$0xff] }
 0x170   :  { %3119 = vmatpush.bf16.msra.mxu1 %v4969_v10  ;;  %3132 = vmatpush.bf16.msra.mxu2 %v4977_v46  ;;  %v4964_v10 = vld [vmem:[%s6613_s5 + $0x210] sm:$0xff]  ;;  %v4986_v29 = vld [vmem:[%s6613_s5 + $0x2c0] sm:$0xff]  ;;  %v5019_v26 = vld [vmem:[%s6613_s5 + $0x3c8] sm:$0xff] }
 0x171   :  { %3145 = vmatpush.bf16.msra.mxu3 %v4985_v14  ;;  %3158 = vmatpush.bf16.msrb.mxu0 %v4993_v27  ;;  %v4972_v46 = vld [vmem:[%s6613_s5 + $0x250] sm:$0xff]  ;;  %v4970_v27 = vld [vmem:[%s6613_s5 + $0x240] sm:$0xff] }
 0x174   :  { %3120 = vmatpush.bf16.msra.mxu1 %v4968_v32  ;;  %3133 = vmatpush.bf16.msra.mxu2 %v4976_v33  ;;  %v5025_v32 = vld [vmem:[%s6613_s5 + $0x3f8] sm:$0xff] }
 0x175   :  { %3146 = vmatpush.bf16.msra.mxu3 %v4984_v37  ;;  %3159 = vmatpush.bf16.msrb.mxu0 %v4992_v38  ;;  %v5000_v37 = vld [vmem:[%s6613_s5 + $0x330] sm:$0xff] }
 0x176   :  { %v5978_v50 = vld [vmem:[#allocation1] sm:$0xff]  ;;  %v5980_v51 = vld [vmem:[#allocation1 + $0x9] sm:$0xff]  ;;  %v5982_v52 = vld [vmem:[#allocation1 + $0x12] sm:$0xff] }
 0x177   :  { %v5988_v55 = vld [vmem:[#allocation1 + $0x1b] sm:$0xff]  ;;  %v5990_v60 = vld [vmem:[#allocation1 + $0x24] sm:$0xff]  ;;  %v5993_v47 = vld [vmem:[#allocation1 + $0x2d] sm:$0xff]  ;;  %v939_v33 = vpack.c.bf16 %v5978_v50, %v5978_v50  ;;  %v940_v35 = vpack.c.bf16 %v5980_v51, %v5980_v51  ;;  %v941_v39 = vpack.c.bf16 %v5982_v52, %v5982_v52 }
 0x178   :  { %3121 = vmatpush.bf16.msra.mxu1 %v4967_v42  ;;  %3134 = vmatpush.bf16.msra.mxu2 %v4975_v43  ;;  %v5995_v62 = vld [vmem:[#allocation1 + $0x36] sm:$0xff]  ;;  %v5997_v63 = vld [vmem:[#allocation1 + $0x3f] sm:$0xff]  ;;  %v942_v40 = vpack.c.bf16 %v5988_v55, %v5988_v55  ;;  %v4999_v43 = vld [vmem:[%s6613_s5 + $0x328] sm:$0xff] }
 0x179   :  { %3147 = vmatpush.bf16.msra.mxu3 %v4983_v45  ;;  %3160 = vmatpush.bf16.msrb.mxu0 %v4991_v48  ;;  %879 = vst [vmem:[#allocation1] ss:$9 sm:$0xff] %v829_v53  ;;  %v5008_v38 = vld [vmem:[%s6613_s5 + $0x370] sm:$0xff]  ;;  %v5015_v45 = vld [vmem:[%s6613_s5 + $0x3a8] sm:$0xff]  ;;  %v5006_v50 = vld [vmem:[%s6613_s5 + $0x360] sm:$0xff] }
 0x17a   :  { %880 = vst [vmem:[#allocation1 + $0x1] ss:$9 sm:$0xff] %v845_v61  ;;  %v5024_v42 = vld [vmem:[%s6613_s5 + $0x3f0] sm:$0xff]  ;;  %v5023_v48 = vld [vmem:[%s6613_s5 + $0x3e8] sm:$0xff]  ;;  %v5014_v51 = vld [vmem:[%s6613_s5 + $0x3a0] sm:$0xff] }
 0x17b   :  { %v5022_v52 = vld [vmem:[%s6613_s5 + $0x3e0] sm:$0xff]  ;;  %v4997_v53 = vld [vmem:[%s6613_s5 + $0x318] sm:$0xff] }
 0x17c   :  { %3122 = vmatpush.bf16.msra.mxu1 %v4966_v49  ;;  %3135 = vmatpush.bf16.msra.mxu2 %v4974_v54  ;;  %v4998_v49 = vld [vmem:[%s6613_s5 + $0x320] sm:$0xff]  ;;  %v5005_v54 = vld [vmem:[%s6613_s5 + $0x358] sm:$0xff] }
 0x17d   :  { %3148 = vmatpush.bf16.msra.mxu3 %v4982_v0  ;;  %3161 = vmatpush.bf16.msrb.mxu0 %v4990_v23  ;;  %v5013_v55 = vld [vmem:[%s6613_s5 + $0x398] sm:$0xff]  ;;  %v4996_v0 = vld [vmem:[%s6613_s5 + $0x310] sm:$0xff] }
 0x17e   :  { %3075 = vmatmul.bf16.vlgmr.msrb.gmra.mxu1 %v935_v1  ;;  %3088 = vmatmul.bf16.vlgmr.msrb.gmra.mxu2 %v936_v2  ;;  %v5021_v61 = vld [vmem:[%s6613_s5 + $0x3d8] sm:$0xff]  ;;  %v5004_v23 = vld [vmem:[%s6613_s5 + $0x350] sm:$0xff]  ;;  %v4995_v2 = vld [vmem:[%s6613_s5 + $0x308] sm:$0xff] }
 0x17f   :  { %3101 = vmatmul.bf16.vlgmr.msrb.gmra.mxu3 %v937_v7  ;;  %3114 = vmatmul.bf16.vlgmr.msra.gmra.mxu0 %v938_v8  ;;  %v5020_v1 = vld [vmem:[%s6613_s5 + $0x3d0] sm:$0xff]  ;;  %v4994_v7 = vld [vmem:[%s6613_s5 + $0x300] sm:$0xff] }
 0x180   :  { %3123 = vmatpush.bf16.msra.mxu1 %v4965_v3  ;;  %3136 = vmatpush.bf16.msra.mxu2 %v4973_v4  ;;  %v5003_v3 = vld [vmem:[%s6613_s5 + $0x348] sm:$0xff]  ;;  %v5002_v8 = vld [vmem:[%s6613_s5 + $0x340] sm:$0xff] }
 0x181   :  { %3149 = vmatpush.bf16.msra.mxu3 %v4981_v6  ;;  %3162 = vmatpush.bf16.msrb.mxu0 %v4989_v59  ;;  %v6042_v5 = vld [vmem:[#allocation1] sm:$0xff]  ;;  %v6044_v13 = vld [vmem:[#allocation1 + $0x9] sm:$0xff]  ;;  %v6046_v14 = vld [vmem:[#allocation1 + $0x12] sm:$0xff] }
 0x182   :  { %v6052_v17 = vld [vmem:[#allocation1 + $0x1b] sm:$0xff]  ;;  %v6054_v19 = vld [vmem:[#allocation1 + $0x24] sm:$0xff]  ;;  %v6057_v21 = vld [vmem:[#allocation1 + $0x2d] sm:$0xff] }
 0x183   :  { %v6059_v22 = vld [vmem:[#allocation1 + $0x36] sm:$0xff]  ;;  %v6061_v57 = vld [vmem:[#allocation1 + $0x3f] sm:$0xff]  ;;  %v5011_v4 = vld [vmem:[%s6613_s5 + $0x388] sm:$0xff] }
 0x184   :  { %3124 = vmatpush.bf16.msra.mxu1 %v4964_v10  ;;  %3137 = vmatpush.bf16.msra.mxu2 %v4972_v46  ;;  %889 = vst [vmem:[#allocation1] ss:$9 sm:$0xff] %v833_v15  ;;  %v5010_v6 = vld [vmem:[%s6613_s5 + $0x380] sm:$0xff]  ;;  %v5049_v10 = vld [vmem:[%s6613_s5 + $0x4b8] sm:$0xff]  ;;  %v5040_v15 = vld [vmem:[%s6613_s5 + $0x470] sm:$0xff] }
 0x185   :  { %3150 = vmatpush.bf16.msra.mxu3 %v4980_v58  ;;  %3163 = vmatpush.bf16.msrb.mxu0 %v4988_v11  ;;  %890 = vst [vmem:[#allocation1 + $0x1] ss:$9 sm:$0xff] %v849_v20  ;;  %v5018_v59 = vld [vmem:[%s6613_s5 + $0x3c0] sm:$0xff]  ;;  %v5057_v46 = vld [vmem:[%s6613_s5 + $0x4f8] sm:$0xff]  ;;  %v943_v58 = vpack.c.bf16 %v5990_v60, %v5990_v60  ;;  %v944_v11 = vpack.c.bf16 %v5993_v47, %v5993_v47  ;;  %v5048_v60 = vld [vmem:[%s6613_s5 + $0x4b0] sm:$0xff] }
 0x186   :  { %v946_v20 = vpack.c.bf16 %v5997_v63, %v5997_v63  ;;  %v5056_v47 = vld [vmem:[%s6613_s5 + $0x4f0] sm:$0xff]  ;;  %v5039_v63 = vld [vmem:[%s6613_s5 + $0x468] sm:$0xff] }
 0x188   :  { %3125 = vmatpush.bf16.msra.mxu1 %v4963_v12  ;;  %3138 = vmatpush.bf16.msra.mxu2 %v4971_v16  ;;  %v5032_v12 = vld [vmem:[%s6613_s5 + $0x430] sm:$0xff]  ;;  %v945_v16 = vpack.c.bf16 %v5995_v62, %v5995_v62  ;;  %v5031_v62 = vld [vmem:[%s6613_s5 + $0x428] sm:$0xff] }
 0x189   :  { %3151 = vmatpush.bf16.msra.mxu3 %v4979_v24  ;;  %3164 = vmatpush.bf16.msrb.mxu0 %v4987_v25  ;;  %v5047_v24 = vld [vmem:[%s6613_s5 + $0x4a8] sm:$0xff] }
 0x18a   :  { %v5055_v25 = vld [vmem:[%s6613_s5 + $0x4e8] sm:$0xff] }
 0x18c   :  { %3126 = vmatpush.bf16.msra.mxu1 %v4962_v34  ;;  %3139 = vmatpush.bf16.msra.mxu2 %v4970_v27  ;;  %v5030_v34 = vld [vmem:[%s6613_s5 + $0x420] sm:$0xff] }
 0x18d   :  { %3152 = vmatpush.bf16.msra.mxu3 %v4978_v28  ;;  %3165 = vmatpush.bf16.msrb.mxu0 %v4986_v29  ;;  %v5038_v27 = vld [vmem:[%s6613_s5 + $0x460] sm:$0xff] }
 0x18e   :  { %v5046_v28 = vld [vmem:[%s6613_s5 + $0x4a0] sm:$0xff] }
 0x18f   :  { %3127 = vmatmul.bf16.vlgmr.msra.gmra.mxu1 %v939_v33  ;;  %3140 = vmatmul.bf16.vlgmr.msra.gmra.mxu2 %v940_v35  ;;  %v5054_v29 = vld [vmem:[%s6613_s5 + $0x4e0] sm:$0xff]  ;;  %v5028_v33 = vld [vmem:[%s6613_s5 + $0x410] sm:$0xff] }
 0x190   :  { %3171 = vmatpush.bf16.msrb.mxu1 %v5001_v30  ;;  %3184 = vmatpush.bf16.msrb.mxu2 %v5009_v31  ;;  %v5029_v30 = vld [vmem:[%s6613_s5 + $0x418] sm:$0xff]  ;;  %v5036_v35 = vld [vmem:[%s6613_s5 + $0x450] sm:$0xff] }
 0x191   :  { %3197 = vmatpush.bf16.msrb.mxu3 %v5017_v18  ;;  %3210 = vmatpush.bf16.msra.mxu0 %v5025_v32  ;;  %v5037_v31 = vld [vmem:[%s6613_s5 + $0x458] sm:$0xff] }
 0x192   :  { %3153 = vmatmul.bf16.vlgmr.msra.gmra.mxu3 %v941_v39  ;;  %3166 = vmatmul.bf16.vlgmr.msrb.gmra.mxu0 %v942_v40  ;;  %v5045_v18 = vld [vmem:[%s6613_s5 + $0x498] sm:$0xff]  ;;  %v5027_v39 = vld [vmem:[%s6613_s5 + $0x408] sm:$0xff] }
 0x193   :  { %v5053_v32 = vld [vmem:[%s6613_s5 + $0x4d8] sm:$0xff]  ;;  %v5035_v40 = vld [vmem:[%s6613_s5 + $0x448] sm:$0xff] }
 0x194   :  { %3172 = vmatpush.bf16.msrb.mxu1 %v5000_v37  ;;  %3185 = vmatpush.bf16.msrb.mxu2 %v5008_v38  ;;  %v5044_v37 = vld [vmem:[%s6613_s5 + $0x490] sm:$0xff] }
 0x195   :  { %3198 = vmatpush.bf16.msrb.mxu3 %v5016_v41  ;;  %3211 = vmatpush.bf16.msra.mxu0 %v5024_v42  ;;  %v5052_v38 = vld [vmem:[%s6613_s5 + $0x4d0] sm:$0xff]  ;;  %v5043_v41 = vld [vmem:[%s6613_s5 + $0x488] sm:$0xff] }
 0x196   :  { %v5051_v42 = vld [vmem:[%s6613_s5 + $0x4c8] sm:$0xff] }
 0x198   :  { %3173 = vmatpush.bf16.msrb.mxu1 %v4999_v43  ;;  %3186 = vmatpush.bf16.msrb.mxu2 %v5007_v44  ;;  %v5026_v43 = vld [vmem:[%s6613_s5 + $0x400] sm:$0xff] }
 0x199   :  { %3199 = vmatpush.bf16.msrb.mxu3 %v5015_v45  ;;  %3212 = vmatpush.bf16.msra.mxu0 %v5023_v48  ;;  %v5034_v44 = vld [vmem:[%s6613_s5 + $0x440] sm:$0xff] }
 0x19a   :  { %v5042_v45 = vld [vmem:[%s6613_s5 + $0x480] sm:$0xff] }
 0x19b   :  { %v5050_v48 = vld [vmem:[%s6613_s5 + $0x4c0] sm:$0xff] }
 0x19c   :  { %3174 = vmatpush.bf16.msrb.mxu1 %v4998_v49  ;;  %3187 = vmatpush.bf16.msrb.mxu2 %v5006_v50  ;;  %v5065_v49 = vld [vmem:[%s6613_s5 + $0x538] sm:$0xff] }
 0x19d   :  { %3200 = vmatpush.bf16.msrb.mxu3 %v5014_v51  ;;  %3213 = vmatpush.bf16.msra.mxu0 %v5022_v52  ;;  %v5073_v50 = vld [vmem:[%s6613_s5 + $0x578] sm:$0xff] }
 0x19e   :  { %v5081_v51 = vld [vmem:[%s6613_s5 + $0x5b8] sm:$0xff] }
 0x19f   :  { %v5089_v52 = vld [vmem:[%s6613_s5 + $0x5f8] sm:$0xff] }
 0x1a0   :  { %3175 = vmatpush.bf16.msrb.mxu1 %v4997_v53  ;;  %3188 = vmatpush.bf16.msrb.mxu2 %v5005_v54  ;;  %v947_v53 = vpack.c.bf16 %v6042_v5, %v6042_v5  ;;  %v948_v54 = vpack.c.bf16 %v6044_v13, %v6044_v13  ;;  %v5080_v5 = vld [vmem:[%s6613_s5 + $0x5b0] sm:$0xff] }
 0x1a1   :  { %3201 = vmatpush.bf16.msrb.mxu3 %v5013_v55  ;;  %3214 = vmatpush.bf16.msra.mxu0 %v5021_v61  ;;  %v5064_v55 = vld [vmem:[%s6613_s5 + $0x530] sm:$0xff] }
 0x1a2   :  { %v5072_v61 = vld [vmem:[%s6613_s5 + $0x570] sm:$0xff] }
 0x1a3   :  { %v5088_v13 = vld [vmem:[%s6613_s5 + $0x5f0] sm:$0xff] }
 0x1a4   :  { %3176 = vmatpush.bf16.msrb.mxu1 %v4996_v0  ;;  %3189 = vmatpush.bf16.msrb.mxu2 %v5004_v23  ;;  %v949_v0 = vpack.c.bf16 %v6046_v14, %v6046_v14  ;;  %v950_v23 = vpack.c.bf16 %v6052_v17, %v6052_v17  ;;  %v5063_v14 = vld [vmem:[%s6613_s5 + $0x528] sm:$0xff] }
 0x1a5   :  { %3202 = vmatpush.bf16.msrb.mxu3 %v5012_v56  ;;  %3215 = vmatpush.bf16.msra.mxu0 %v5020_v1  ;;  %v5071_v17 = vld [vmem:[%s6613_s5 + $0x568] sm:$0xff] }
 0x1a6   :  { %v5079_v56 = vld [vmem:[%s6613_s5 + $0x5a8] sm:$0xff] }
 0x1a7   :  { %v5087_v1 = vld [vmem:[%s6613_s5 + $0x5e8] sm:$0xff] }
 0x1a8   :  { %3177 = vmatpush.bf16.msrb.mxu1 %v4995_v2  ;;  %3190 = vmatpush.bf16.msrb.mxu2 %v5003_v3  ;;  %v5062_v2 = vld [vmem:[%s6613_s5 + $0x520] sm:$0xff] }
 0x1a9   :  { %3203 = vmatpush.bf16.msrb.mxu3 %v5011_v4  ;;  %3216 = vmatpush.bf16.msra.mxu0 %v5019_v26  ;;  %v5070_v3 = vld [vmem:[%s6613_s5 + $0x560] sm:$0xff] }
 0x1aa   :  { %v5078_v4 = vld [vmem:[%s6613_s5 + $0x5a0] sm:$0xff] }
 0x1ab   :  { %v5086_v26 = vld [vmem:[%s6613_s5 + $0x5e0] sm:$0xff] }
 0x1ac   :  { %3178 = vmatpush.bf16.msrb.mxu1 %v4994_v7  ;;  %3191 = vmatpush.bf16.msrb.mxu2 %v5002_v8  ;;  %v5061_v7 = vld [vmem:[%s6613_s5 + $0x518] sm:$0xff] }
 0x1ad   :  { %3204 = vmatpush.bf16.msrb.mxu3 %v5010_v6  ;;  %3217 = vmatpush.bf16.msra.mxu0 %v5018_v59  ;;  %v5069_v8 = vld [vmem:[%s6613_s5 + $0x558] sm:$0xff] }
 0x1ae   :  { %v5077_v6 = vld [vmem:[%s6613_s5 + $0x598] sm:$0xff] }
 0x1af   :  { %3179 = vmatmul.bf16.vlgmr.msrb.gmra.mxu1 %v943_v58  ;;  %3192 = vmatmul.bf16.vlgmr.msrb.gmra.mxu2 %v944_v11  ;;  %v5085_v59 = vld [vmem:[%s6613_s5 + $0x5d8] sm:$0xff]  ;;  %v5059_v58 = vld [vmem:[%s6613_s5 + $0x508] sm:$0xff] }
 0x1b0   :  { %3223 = vmatpush.bf16.msra.mxu1 %v5033_v36  ;;  %3236 = vmatpush.bf16.msra.mxu2 %v5041_v9  ;;  %v5060_v36 = vld [vmem:[%s6613_s5 + $0x510] sm:$0xff]  ;;  %v5067_v11 = vld [vmem:[%s6613_s5 + $0x548] sm:$0xff] }
 0x1b1   :  { %3249 = vmatpush.bf16.msra.mxu3 %v5049_v10  ;;  %3262 = vmatpush.bf16.msrb.mxu0 %v5057_v46  ;;  %v5068_v9 = vld [vmem:[%s6613_s5 + $0x550] sm:$0xff] }
 0x1b2   :  { %3205 = vmatmul.bf16.vlgmr.msrb.gmra.mxu3 %v945_v16  ;;  %3218 = vmatmul.bf16.vlgmr.msra.gmra.mxu0 %v946_v20  ;;  %v5076_v10 = vld [vmem:[%s6613_s5 + $0x590] sm:$0xff]  ;;  %v5058_v16 = vld [vmem:[%s6613_s5 + $0x500] sm:$0xff] }
 0x1b3   :  { %v5084_v46 = vld [vmem:[%s6613_s5 + $0x5d0] sm:$0xff]  ;;  %v5066_v20 = vld [vmem:[%s6613_s5 + $0x540] sm:$0xff] }
 0x1b4   :  { %3224 = vmatpush.bf16.msra.mxu1 %v5032_v12  ;;  %3237 = vmatpush.bf16.msra.mxu2 %v5040_v15  ;;  %v5075_v12 = vld [vmem:[%s6613_s5 + $0x588] sm:$0xff] }
 0x1b5   :  { %3250 = vmatpush.bf16.msra.mxu3 %v5048_v60  ;;  %3263 = vmatpush.bf16.msrb.mxu0 %v5056_v47  ;;  %v5083_v15 = vld [vmem:[%s6613_s5 + $0x5c8] sm:$0xff]  ;;  %v5074_v60 = vld [vmem:[%s6613_s5 + $0x580] sm:$0xff] }
 0x1b6   :  { %v5082_v47 = vld [vmem:[%s6613_s5 + $0x5c0] sm:$0xff] }
 0x1b8   :  { %3225 = vmatpush.bf16.msra.mxu1 %v5031_v62  ;;  %3238 = vmatpush.bf16.msra.mxu2 %v5039_v63  ;;  %v5097_v62 = vld [vmem:[%s6613_s5 + $0x638] sm:$0xff] }
 0x1b9   :  { %3251 = vmatpush.bf16.msra.mxu3 %v5047_v24  ;;  %3264 = vmatpush.bf16.msrb.mxu0 %v5055_v25  ;;  %v5105_v63 = vld [vmem:[%s6613_s5 + $0x678] sm:$0xff] }
 0x1ba   :  { %v5113_v24 = vld [vmem:[%s6613_s5 + $0x6b8] sm:$0xff] }
 0x1bb   :  { %v5121_v25 = vld [vmem:[%s6613_s5 + $0x6f8] sm:$0xff] }
 0x1bc   :  { %3226 = vmatpush.bf16.msra.mxu1 %v5030_v34  ;;  %3239 = vmatpush.bf16.msra.mxu2 %v5038_v27  ;;  %v951_v34 = vpack.c.bf16 %v6054_v19, %v6054_v19  ;;  %v952_v27 = vpack.c.bf16 %v6057_v21, %v6057_v21  ;;  %v5112_v19 = vld [vmem:[%s6613_s5 + $0x6b0] sm:$0xff] }
 0x1bd   :  { %3252 = vmatpush.bf16.msra.mxu3 %v5046_v28  ;;  %3265 = vmatpush.bf16.msrb.mxu0 %v5054_v29  ;;  %v5096_v28 = vld [vmem:[%s6613_s5 + $0x630] sm:$0xff] }
 0x1be   :  { %v5104_v29 = vld [vmem:[%s6613_s5 + $0x670] sm:$0xff] }
 0x1bf   :  { %v5120_v21 = vld [vmem:[%s6613_s5 + $0x6f0] sm:$0xff] }
 0x1c0   :  { %3227 = vmatpush.bf16.msra.mxu1 %v5029_v30  ;;  %3240 = vmatpush.bf16.msra.mxu2 %v5037_v31  ;;  %v953_v30 = vpack.c.bf16 %v6059_v22, %v6059_v22  ;;  %v954_v31 = vpack.c.bf16 %v6061_v57, %v6061_v57  ;;  %v5095_v22 = vld [vmem:[%s6613_s5 + $0x628] sm:$0xff] }
 0x1c1   :  { %3253 = vmatpush.bf16.msra.mxu3 %v5045_v18  ;;  %3266 = vmatpush.bf16.msrb.mxu0 %v5053_v32  ;;  %v5103_v57 = vld [vmem:[%s6613_s5 + $0x668] sm:$0xff]  ;;  %v5160_v32 = vld [vmem:[%s6614_s6] ss:$0 sm:$0xff] }
 0x1c4   :  { %3228 = vmatpush.bf16.msra.mxu1 %v5028_v33  ;;  %3241 = vmatpush.bf16.msra.mxu2 %v5036_v35  ;;  %v5111_v35 = vld [vmem:[%s6613_s5 + $0x6a8] sm:$0xff] }
 0x1c5   :  { %3254 = vmatpush.bf16.msra.mxu3 %v5044_v37  ;;  %3267 = vmatpush.bf16.msrb.mxu0 %v5052_v38  ;;  %v5119_v37 = vld [vmem:[%s6613_s5 + $0x6e8] sm:$0xff] }
 0x1c8   :  { %3229 = vmatpush.bf16.msra.mxu1 %v5027_v39  ;;  %3242 = vmatpush.bf16.msra.mxu2 %v5035_v40  ;;  %v5094_v39 = vld [vmem:[%s6613_s5 + $0x620] sm:$0xff] }
 0x1c9   :  { %3255 = vmatpush.bf16.msra.mxu3 %v5043_v41  ;;  %3268 = vmatpush.bf16.msrb.mxu0 %v5051_v42  ;;  %v5102_v40 = vld [vmem:[%s6613_s5 + $0x660] sm:$0xff] }
 0x1ca   :  { %v5110_v41 = vld [vmem:[%s6613_s5 + $0x6a0] sm:$0xff] }
 0x1cb   :  { %v5118_v42 = vld [vmem:[%s6613_s5 + $0x6e0] sm:$0xff] }
 0x1cc   :  { %3230 = vmatpush.bf16.msra.mxu1 %v5026_v43  ;;  %3243 = vmatpush.bf16.msra.mxu2 %v5034_v44 }
 0x1cd   :  { %3256 = vmatpush.bf16.msra.mxu3 %v5042_v45  ;;  %3269 = vmatpush.bf16.msrb.mxu0 %v5050_v48 }
 0x1cf   :  { %3231 = vmatmul.bf16.vlgmr.msra.gmra.mxu1 %v947_v53  ;;  %3244 = vmatmul.bf16.vlgmr.msra.gmra.mxu2 %v948_v54  ;;  %v5109_v53 = vld [vmem:[%s6613_s5 + $0x698] sm:$0xff] }
 0x1d0   :  { %3275 = vmatpush.bf16.msrb.mxu1 %v5065_v49  ;;  %3288 = vmatpush.bf16.msrb.mxu2 %v5073_v50  ;;  %v5093_v50 = vld [vmem:[%s6613_s5 + $0x618] sm:$0xff] }
 0x1d1   :  { %3301 = vmatpush.bf16.msrb.mxu3 %v5081_v51  ;;  %3314 = vmatpush.bf16.msra.mxu0 %v5089_v52  ;;  %v5101_v51 = vld [vmem:[%s6613_s5 + $0x658] sm:$0xff] }
 0x1d2   :  { %3257 = vmatmul.bf16.vlgmr.msra.gmra.mxu3 %v949_v0  ;;  %3270 = vmatmul.bf16.vlgmr.msrb.gmra.mxu0 %v950_v23  ;;  %v5117_v54 = vld [vmem:[%s6613_s5 + $0x6d8] sm:$0xff]  ;;  %v5100_v0 = vld [vmem:[%s6613_s5 + $0x650] sm:$0xff] }
 0x1d3   :  { %v5108_v23 = vld [vmem:[%s6613_s5 + $0x690] sm:$0xff] }
 0x1d4   :  { %3276 = vmatpush.bf16.msrb.mxu1 %v5064_v55  ;;  %3289 = vmatpush.bf16.msrb.mxu2 %v5072_v61  ;;  %v5092_v61 = vld [vmem:[%s6613_s5 + $0x610] sm:$0xff] }
 0x1d5   :  { %3302 = vmatpush.bf16.msrb.mxu3 %v5080_v5  ;;  %3315 = vmatpush.bf16.msra.mxu0 %v5088_v13  ;;  %v5116_v5 = vld [vmem:[%s6613_s5 + $0x6d0] sm:$0xff] }
 0x1d8   :  { %3277 = vmatpush.bf16.msrb.mxu1 %v5063_v14  ;;  %3290 = vmatpush.bf16.msrb.mxu2 %v5071_v17 }
 0x1d9   :  { %3303 = vmatpush.bf16.msrb.mxu3 %v5079_v56  ;;  %3316 = vmatpush.bf16.msra.mxu0 %v5087_v1  ;;  %v5091_v56 = vld [vmem:[%s6613_s5 + $0x608] sm:$0xff] }
 0x1da   :  { %v5099_v1 = vld [vmem:[%s6613_s5 + $0x648] sm:$0xff] }
 0x1dc   :  { %3278 = vmatpush.bf16.msrb.mxu1 %v5062_v2  ;;  %3291 = vmatpush.bf16.msrb.mxu2 %v5070_v3 }
 0x1dd   :  { %3304 = vmatpush.bf16.msrb.mxu3 %v5078_v4  ;;  %3317 = vmatpush.bf16.msra.mxu0 %v5086_v26  ;;  %v5107_v4 = vld [vmem:[%s6613_s5 + $0x688] sm:$0xff] }
 0x1de   :  { %v5115_v26 = vld [vmem:[%s6613_s5 + $0x6c8] sm:$0xff] }
 0x1e0   :  { %3279 = vmatpush.bf16.msrb.mxu1 %v5061_v7  ;;  %3292 = vmatpush.bf16.msrb.mxu2 %v5069_v8  ;;  %v5090_v7 = vld [vmem:[%s6613_s5 + $0x600] sm:$0xff] }
 0x1e1   :  { %3305 = vmatpush.bf16.msrb.mxu3 %v5077_v6  ;;  %3318 = vmatpush.bf16.msra.mxu0 %v5085_v59  ;;  %v5098_v8 = vld [vmem:[%s6613_s5 + $0x640] sm:$0xff] }
 0x1e2   :  { %v5106_v6 = vld [vmem:[%s6613_s5 + $0x680] sm:$0xff] }
 0x1e3   :  { %v5114_v59 = vld [vmem:[%s6613_s5 + $0x6c0] sm:$0xff] }
 0x1e4   :  { %3280 = vmatpush.bf16.msrb.mxu1 %v5060_v36  ;;  %3293 = vmatpush.bf16.msrb.mxu2 %v5068_v9  ;;  %v5129_v9 = vld [vmem:[%s6613_s5 + $0x738] sm:$0xff] }
 0x1e5   :  { %3306 = vmatpush.bf16.msrb.mxu3 %v5076_v10  ;;  %3319 = vmatpush.bf16.msra.mxu0 %v5084_v46  ;;  %v5137_v10 = vld [vmem:[%s6613_s5 + $0x778] sm:$0xff] }
 0x1e8   :  { %3281 = vmatpush.bf16.msrb.mxu1 %v5059_v58  ;;  %3294 = vmatpush.bf16.msrb.mxu2 %v5067_v11  ;;  %v891_v11 = vld [vmem:[#allocation1] sm:$0xff] }
 0x1e9   :  { %3307 = vmatpush.bf16.msrb.mxu3 %v5075_v12  ;;  %3320 = vmatpush.bf16.msra.mxu0 %v5083_v15  ;;  %v5145_v12 = vld [vmem:[%s6613_s5 + $0x7b8] sm:$0xff] }
 0x1ea   :  { %v5153_v15 = vld [vmem:[%s6613_s5 + $0x7f8] sm:$0xff] }
 0x1eb   :  { %v3024_v18 = vpop.f32.mrf.mxu1 }
 0x1ec   :  { %3282 = vmatpush.bf16.msrb.mxu1 %v5058_v16  ;;  %3295 = vmatpush.bf16.msrb.mxu2 %v5066_v20  ;;  %v3063_v33 = vpop.f32.mrf.mxu0  ;;  %v3025_v38 = vadd.f32 %v5160_v32, %v3024_v18  ;;  %v892_v16 = vld [vmem:[#allocation1 + $0x9] sm:$0xff] }
 0x1ed   :  { %3308 = vmatpush.bf16.msrb.mxu3 %v5074_v60  ;;  %3321 = vmatpush.bf16.msra.mxu0 %v5082_v47  ;;  %v893_v47 = vld [vmem:[#allocation1 + $0x12] sm:$0xff]  ;;  %v5127_v18 = vld [vmem:[%s6613_s5 + $0x728] sm:$0xff] }
 0x1ee   :  { %v5143_v32 = vld [vmem:[%s6613_s5 + $0x7a8] sm:$0xff] }
 0x1ef   :  { %3283 = vmatmul.bf16.vlgmr.msrb.gmra.mxu1 %v951_v34  ;;  %3296 = vmatmul.bf16.vlgmr.msrb.gmra.mxu2 %v952_v27  ;;  %v5128_v34 = vld [vmem:[%s6613_s5 + $0x730] sm:$0xff] }
 0x1f0   :  { %3327 = vmatpush.bf16.msra.mxu1 %v5097_v62  ;;  %3340 = vmatpush.bf16.msra.mxu2 %v5105_v63  ;;  %v894_v62 = vld [vmem:[#allocation1 + $0x1b] sm:$0xff]  ;;  %v5136_v27 = vld [vmem:[%s6613_s5 + $0x770] sm:$0xff] }
 0x1f1   :  { %3353 = vmatpush.bf16.msra.mxu3 %v5113_v24  ;;  %3366 = vmatpush.bf16.msrb.mxu0 %v5121_v25  ;;  %v3037_v43 = vpop.f32.mrf.mxu2  ;;  %v955_v24 = vpack.c.bf16 %v891_v11, %v891_v11  ;;  %v956_v25 = vpack.c.bf16 %v892_v16, %v892_v16 }
 0x1f2   :  { %3309 = vmatmul.bf16.vlgmr.msrb.gmra.mxu3 %v953_v30  ;;  %3322 = vmatmul.bf16.vlgmr.msra.gmra.mxu0 %v954_v31  ;;  %v3038_v44 = vadd.f32 %v3037_v43, %v3025_v38  ;;  %v3050_v45 = vpop.f32.mrf.mxu3  ;;  %v958_v30 = vpack.c.bf16 %v894_v62, %v894_v62  ;;  %v5144_v31 = vld [vmem:[%s6613_s5 + $0x7b0] sm:$0xff]  ;;  %v5125_v43 = vld [vmem:[%s6613_s5 + $0x718] sm:$0xff] }
 0x1f3   :  { %v3026_v48 = vpop.f32.mrf.mxu1 }
 0x1f4   :  { %3328 = vmatpush.bf16.msra.mxu1 %v5096_v28  ;;  %3341 = vmatpush.bf16.msra.mxu2 %v5104_v29  ;;  %v3051_v49 = vadd.f32 %v3050_v45, %v3038_v44  ;;  %v3065_v52 = vpop.f32.mrf.mxu0  ;;  %v957_v29 = vpack.c.bf16 %v893_v47, %v893_v47  ;;  %v5133_v44 = vld [vmem:[%s6613_s5 + $0x758] sm:$0xff] }
 0x1f5   :  { %3354 = vmatpush.bf16.msra.mxu3 %v5112_v19  ;;  %3367 = vmatpush.bf16.msrb.mxu0 %v5120_v21  ;;  %v5152_v19 = vld [vmem:[%s6613_s5 + $0x7f0] sm:$0xff]  ;;  %v5141_v45 = vld [vmem:[%s6613_s5 + $0x798] sm:$0xff] }
 0x1f6   :  { %v3064_v55 = vadd.f32 %v3063_v33, %v3051_v49  ;;  %v5151_v33 = vld [vmem:[%s6613_s5 + $0x7e8] sm:$0xff]  ;;  %v5149_v48 = vld [vmem:[%s6613_s5 + $0x7d8] sm:$0xff] }
 0x1f8   :  { %3329 = vmatpush.bf16.msra.mxu1 %v5095_v22  ;;  %3342 = vmatpush.bf16.msra.mxu2 %v5103_v57  ;;  %v5135_v22 = vld [vmem:[%s6613_s5 + $0x768] sm:$0xff] }
 0x1f9   :  { %3355 = vmatpush.bf16.msra.mxu3 %v5111_v35  ;;  %3368 = vmatpush.bf16.msrb.mxu0 %v5119_v37  ;;  %v3039_v13 = vpop.f32.mrf.mxu2 }
 0x1fa   :  { %v3052_v14 = vpop.f32.mrf.mxu3  ;;  %v5123_v13 = vld [vmem:[%s6613_s5 + $0x708] sm:$0xff] }
 0x1fb   :  { %v3076_v17 = vpop.f32.mrf.mxu1  ;;  %v5131_v14 = vld [vmem:[%s6613_s5 + $0x748] sm:$0xff] }
 0x1fc   :  { %3330 = vmatpush.bf16.msra.mxu1 %v5094_v39  ;;  %3343 = vmatpush.bf16.msra.mxu2 %v5102_v40  ;;  %v3077_v2 = vadd.f32 %v3076_v17, %v3064_v55  ;;  %v3115_v3 = vpop.f32.mrf.mxu0  ;;  %v5126_v39 = vld [vmem:[%s6613_s5 + $0x720] sm:$0xff]  ;;  %v5124_v55 = vld [vmem:[%s6613_s5 + $0x710] sm:$0xff]  ;;  %v5139_v17 = vld [vmem:[%s6613_s5 + $0x788] sm:$0xff] }
 0x1fd   :  { %3356 = vmatpush.bf16.msra.mxu3 %v5110_v41  ;;  %3369 = vmatpush.bf16.msrb.mxu0 %v5118_v42  ;;  %v5134_v40 = vld [vmem:[%s6613_s5 + $0x760] sm:$0xff] }
 0x1fe   :  { %v5142_v41 = vld [vmem:[%s6613_s5 + $0x7a0] sm:$0xff] }
 0x1ff   :  { %v5150_v42 = vld [vmem:[%s6613_s5 + $0x7e0] sm:$0xff] }
 0x200   :  { %3331 = vmatpush.bf16.msra.mxu1 %v5093_v50  ;;  %3344 = vmatpush.bf16.msra.mxu2 %v5101_v51 }
 0x201   :  { %3357 = vmatpush.bf16.msra.mxu3 %v5109_v53  ;;  %3370 = vmatpush.bf16.msrb.mxu0 %v5117_v54  ;;  %v3089_v36 = vpop.f32.mrf.mxu2 }
 0x202   :  { %v3090_v46 = vadd.f32 %v3089_v36, %v3077_v2  ;;  %v3102_v58 = vpop.f32.mrf.mxu3  ;;  %v898_v36 = vld [vmem:[#allocation1 + $0x3f] sm:$0xff] }
 0x203   :  { %v3078_v20 = vpop.f32.mrf.mxu1 }
 0x204   :  { %3332 = vmatpush.bf16.msra.mxu1 %v5092_v61  ;;  %3345 = vmatpush.bf16.msra.mxu2 %v5100_v0  ;;  %v3103_v60 = vadd.f32 %v3102_v58, %v3090_v46  ;;  %v3117_v63 = vpop.f32.mrf.mxu0  ;;  %v5132_v61 = vld [vmem:[%s6613_s5 + $0x750] sm:$0xff]  ;;  %v962_v58 = vpack.c.bf16 %v898_v36, %v898_v36 }
 0x205   :  { %3358 = vmatpush.bf16.msra.mxu3 %v5108_v23  ;;  %3371 = vmatpush.bf16.msrb.mxu0 %v5116_v5  ;;  %v5140_v0 = vld [vmem:[%s6613_s5 + $0x790] sm:$0xff] }
 0x206   :  { %v3116_v28 = vadd.f32 %v3115_v3, %v3103_v60  ;;  %v5148_v23 = vld [vmem:[%s6613_s5 + $0x7d0] sm:$0xff]  ;;  %v5122_v3 = vld [vmem:[%s6613_s5 + $0x700] sm:$0xff] }
 0x208   :  { %3333 = vmatpush.bf16.msra.mxu1 %v5091_v56  ;;  %3346 = vmatpush.bf16.msra.mxu2 %v5099_v1  ;;  %v5147_v56 = vld [vmem:[%s6613_s5 + $0x7c8] sm:$0xff] }
 0x209   :  { %3359 = vmatpush.bf16.msra.mxu3 %v5107_v4  ;;  %3372 = vmatpush.bf16.msrb.mxu0 %v5115_v26  ;;  %v3091_v21 = vpop.f32.mrf.mxu2  ;;  %v5130_v4 = vld [vmem:[%s6613_s5 + $0x740] sm:$0xff] }
 0x20a   :  { %v3104_v57 = vpop.f32.mrf.mxu3  ;;  %v5138_v26 = vld [vmem:[%s6613_s5 + $0x780] sm:$0xff] }
 0x20c   :  { %3334 = vmatpush.bf16.msra.mxu1 %v5090_v7  ;;  %3347 = vmatpush.bf16.msra.mxu2 %v5098_v8  ;;  %v3128_v35 = vpop.f32.mrf.mxu1  ;;  %v5146_v7 = vld [vmem:[%s6613_s5 + $0x7c0] sm:$0xff] }
 0x20d   :  { %3360 = vmatpush.bf16.msra.mxu3 %v5106_v6  ;;  %3373 = vmatpush.bf16.msrb.mxu0 %v5114_v59  ;;  %v3129_v37 = vadd.f32 %v3128_v35, %v3116_v28  ;;  %v895_v8 = vld [vmem:[#allocation1 + $0x24] sm:$0xff]  ;;  %v896_v6 = vld [vmem:[#allocation1 + $0x2d] sm:$0xff]  ;;  %v897_v59 = vld [vmem:[#allocation1 + $0x36] sm:$0xff] }
 0x20e   :  { %v961_v46 = vpack.c.bf16 %v897_v59, %v897_v59 }
 0x20f   :  { %3335 = vmatmul.bf16.vlgmr.msra.gmra.mxu1 %v955_v24  ;;  %3348 = vmatmul.bf16.vlgmr.msra.gmra.mxu2 %v956_v25  ;;  %v3167_v38 = vpop.f32.mrf.mxu0 }
 0x210   :  { %3379 = vmatpush.bf16.msrb.mxu1 %v5129_v9  ;;  %3392 = vmatpush.bf16.msrb.mxu2 %v5137_v10  ;;  %v959_v9 = vpack.c.bf16 %v895_v8, %v895_v8  ;;  %v960_v10 = vpack.c.bf16 %v896_v6, %v896_v6 }
 0x211   :  { %3405 = vmatpush.bf16.msrb.mxu3 %v5145_v12  ;;  %3418 = vmatpush.bf16.msra.mxu0 %v5153_v15 }
 0x212   :  { %3361 = vmatmul.bf16.vlgmr.msra.gmra.mxu3 %v957_v29  ;;  %3374 = vmatmul.bf16.vlgmr.msrb.gmra.mxu0 %v958_v30  ;;  %v3141_v49 = vpop.f32.mrf.mxu2 }
 0x213   :  { %v3142_v50 = vadd.f32 %v3141_v49, %v3129_v37 }
 0x214   :  { %3380 = vmatpush.bf16.msrb.mxu1 %v5128_v34  ;;  %3393 = vmatpush.bf16.msrb.mxu2 %v5136_v27  ;;  %v3130_v52 = vpop.f32.mrf.mxu1 }
 0x215   :  { %3406 = vmatpush.bf16.msrb.mxu3 %v5144_v31  ;;  %3419 = vmatpush.bf16.msra.mxu0 %v5152_v19  ;;  %v3154_v51 = vpop.f32.mrf.mxu3 }
 0x216   :  { %v3155_v53 = vadd.f32 %v3154_v51, %v3142_v50 }
 0x217   :  { %v3169_v54 = vpop.f32.mrf.mxu0 }
 0x218   :  { %3381 = vmatpush.bf16.msrb.mxu1 %v5127_v18  ;;  %3394 = vmatpush.bf16.msrb.mxu2 %v5135_v22  ;;  %v3168_v5 = vadd.f32 %v3167_v38, %v3155_v53 }
 0x219   :  { %3407 = vmatpush.bf16.msrb.mxu3 %v5143_v32  ;;  %3420 = vmatpush.bf16.msra.mxu0 %v5151_v33 }
 0x21a   :  { %v3143_v1 = vpop.f32.mrf.mxu2 }
 0x21c   :  { %3382 = vmatpush.bf16.msrb.mxu1 %v5126_v39  ;;  %3395 = vmatpush.bf16.msrb.mxu2 %v5134_v40 }
 0x21d   :  { %3408 = vmatpush.bf16.msrb.mxu3 %v5142_v41  ;;  %3421 = vmatpush.bf16.msra.mxu0 %v5150_v42  ;;  %v3156_v2 = vpop.f32.mrf.mxu3 }
 0x220   :  { %3383 = vmatpush.bf16.msrb.mxu1 %v5125_v43  ;;  %3396 = vmatpush.bf16.msrb.mxu2 %v5133_v44  ;;  %v5155_v44 = vld [vmem:[%s6615_s7 + $0x8] sm:$0xff] }
 0x221   :  { %3409 = vmatpush.bf16.msrb.mxu3 %v5141_v45  ;;  %3422 = vmatpush.bf16.msra.mxu0 %v5149_v48 }
 0x224   :  { %3384 = vmatpush.bf16.msrb.mxu1 %v5124_v55  ;;  %3397 = vmatpush.bf16.msrb.mxu2 %v5132_v61  ;;  %v5154_v55 = vld [vmem:[%s6615_s7] sm:$0xff] }
 0x225   :  { %3410 = vmatpush.bf16.msrb.mxu3 %v5140_v0  ;;  %3423 = vmatpush.bf16.msra.mxu0 %v5148_v23 }
 0x228   :  { %3385 = vmatpush.bf16.msrb.mxu1 %v5123_v13  ;;  %3398 = vmatpush.bf16.msrb.mxu2 %v5131_v14 }
 0x229   :  { %3411 = vmatpush.bf16.msrb.mxu3 %v5139_v17  ;;  %3424 = vmatpush.bf16.msra.mxu0 %v5147_v56 }
 0x22c   :  { %3386 = vmatpush.bf16.msrb.mxu1 %v5122_v3  ;;  %3399 = vmatpush.bf16.msrb.mxu2 %v5130_v4  ;;  %v3180_v11 = vpop.f32.mrf.mxu1 }
 0x22d   :  { %3412 = vmatpush.bf16.msrb.mxu3 %v5138_v26  ;;  %3425 = vmatpush.bf16.msra.mxu0 %v5146_v7  ;;  %v3181_v12 = vadd.f32 %v3180_v11, %v3168_v5  ;;  %v5161_v11 = vld [vmem:[%s6616_s8] ss:$0 sm:$0xff] }
 0x22f   :  { %3387 = vmatmul.bf16.vlgmr.msrb.gmra.mxu1 %v959_v9  ;;  %3400 = vmatmul.bf16.vlgmr.msrb.gmra.mxu2 %v960_v10  ;;  %v3219_v15 = vpop.f32.mrf.mxu0 }
 0x230   :  { %3413 = vmatmul.bf16.vlgmr.msrb.gmra.mxu3 %v961_v46  ;;  %3426 = vmatmul.bf16.vlgmr.msra.gmra.mxu0 %v962_v58 }
 0x231   :  { %3463 = vmatpush.bf16.msra.mxu1 %v5155_v44 }
 0x232   :  { %v3193_v16 = vpop.f32.mrf.mxu2 }
 0x233   :  { %v3194_v20 = vadd.f32 %v3193_v16, %v3181_v12 }
 0x234   :  { %v3182_v47 = vpop.f32.mrf.mxu1 }
 0x235   :  { %v3206_v60 = vpop.f32.mrf.mxu3  ;;  %3464 = vmatpush.bf16.msra.mxu1 %v5154_v55 }
 0x236   :  { %v3207_v62 = vadd.f32 %v3206_v60, %v3194_v20 }
 0x237   :  { %v3221_v63 = vpop.f32.mrf.mxu0 }
 0x238   :  { %v3220_v24 = vadd.f32 %v3219_v15, %v3207_v62 }
 0x23a   :  { %v3195_v25 = vpop.f32.mrf.mxu2 }
 0x23d   :  { %v3208_v34 = vpop.f32.mrf.mxu3 }
 0x24c   :  { %v3232_v27 = vpop.f32.mrf.mxu1 }
 0x24d   :  { %v3233_v28 = vadd.f32 %v3232_v27, %v3220_v24 }
 0x24f   :  { %v3271_v29 = vpop.f32.mrf.mxu0 }
 0x252   :  { %v3245_v30 = vpop.f32.mrf.mxu2 }
 0x253   :  { %v3246_v31 = vadd.f32 %v3245_v30, %v3233_v28 }
 0x254   :  { %v3234_v21 = vpop.f32.mrf.mxu1 }
 0x255   :  { %v3258_v19 = vpop.f32.mrf.mxu3 }
 0x256   :  { %v3259_v18 = vadd.f32 %v3258_v19, %v3246_v31 }
 0x257   :  { %v3273_v22 = vpop.f32.mrf.mxu0 }
 0x258   :  { %v3272_v57 = vadd.f32 %v3271_v29, %v3259_v18 }
 0x25a   :  { %v3247_v32 = vpop.f32.mrf.mxu2 }
 0x25d   :  { %v3260_v33 = vpop.f32.mrf.mxu3 }
 0x26c   :  { %v3284_v35 = vpop.f32.mrf.mxu1 }
 0x26d   :  { %v3285_v53 = vadd.f32 %v3284_v35, %v3272_v57 }
 0x26f   :  { %v3323_v37 = vpop.f32.mrf.mxu0 }
 0x272   :  { %v3297_v38 = vpop.f32.mrf.mxu2 }
 0x273   :  { %v3298_v54 = vadd.f32 %v3297_v38, %v3285_v53 }
 0x274   :  { %v3286_v40 = vpop.f32.mrf.mxu1 }
 0x275   :  { %v3310_v39 = vpop.f32.mrf.mxu3 }
 0x276   :  { %v3311_v23 = vadd.f32 %v3310_v39, %v3298_v54 }
 0x277   :  { %v3325_v41 = vpop.f32.mrf.mxu0 }
 0x278   :  { %v3324_v5 = vadd.f32 %v3323_v37, %v3311_v23 }
 0x27a   :  { %v3299_v42 = vpop.f32.mrf.mxu2 }
 0x27d   :  { %v3312_v43 = vpop.f32.mrf.mxu3 }
 0x28c   :  { %v3336_v45 = vpop.f32.mrf.mxu1 }
 0x28d   :  { %v3337_v13 = vadd.f32 %v3336_v45, %v3324_v5 }
 0x28f   :  { %v3375_v48 = vpop.f32.mrf.mxu0 }
 0x292   :  { %v3349_v49 = vpop.f32.mrf.mxu2 }
 0x293   :  { %v3350_v14 = vadd.f32 %v3349_v49, %v3337_v13 }
 0x294   :  { %v3338_v51 = vpop.f32.mrf.mxu1 }
 0x295   :  { %v3362_v50 = vpop.f32.mrf.mxu3 }
 0x296   :  { %v3363_v17 = vadd.f32 %v3362_v50, %v3350_v14 }
 0x297   :  { %v3377_v52 = vpop.f32.mrf.mxu0 }
 0x298   :  { %v3376_v2 = vadd.f32 %v3375_v48, %v3363_v17 }
 0x29a   :  { %v3351_v61 = vpop.f32.mrf.mxu2 }
 0x29d   :  { %v3364_v0 = vpop.f32.mrf.mxu3 }
 0x2ac   :  { %v3388_v56 = vpop.f32.mrf.mxu1 }
 0x2ad   :  { %v3427_v1 = vpop.f32.mrf.mxu0  ;;  %v3389_v3 = vadd.f32 %v3388_v56, %v3376_v2 }
 0x2b2   :  { %v3401_v4 = vpop.f32.mrf.mxu2 }
 0x2b3   :  { %v3402_v26 = vadd.f32 %v3401_v4, %v3389_v3  ;;  %v3414_v7 = vpop.f32.mrf.mxu3 }
 0x2b4   :  { %v3390_v8 = vpop.f32.mrf.mxu1 }
 0x2b5   :  { %v3415_v6 = vadd.f32 %v3414_v7, %v3402_v26  ;;  %v3429_v59 = vpop.f32.mrf.mxu0 }
 0x2b7   :  { %v3428_v36 = vadd.f32 %v3427_v1, %v3415_v6 }
 0x2b9   :  { %v3431_v9 = vmax.f32 %v3428_v36, 0.0 }
 0x2ba   :  { %v3403_v10 = vpop.f32.mrf.mxu2 }
 0x2bb   :  { %v3432_v46 = vpack.c.bf16 %v3431_v9, %v3431_v9  ;;  %v3416_v58 = vpop.f32.mrf.mxu3 }
 0x2bd   :  { %4837 = vmatmul.msk.bf16.vlgmr.msra.gmra.mxu1 %vm3453_vm13, %v3432_v46 }
 0x33a   :  { %v3466_v12 = vpop.f32.mrf.mxu1 }
 0x33b   :  { %v3467_v15 = vadd.f32 %v5161_v11, %v3466_v12 }
 0x33d   :  { %3470 = vst [vmem:[#allocation2] sm:$0x3] %v3467_v15 }
 0x33e   :  { %3481 = dma.vmem_to_hbm [thread:$0]  %s3477_s28, 32, %s3479_s30, [#allocation3]  }
 0x342   :  { %v3468_v16 = vpop.f32.mrf.mxu1 }
 0x343   :  { %5186 = dma.done.wait [#allocation3], 32  }
 0x344   :  { %5187 = vsyncadd [#allocation3], 4294967264 }
 0x345   :  { %3486 = vsyncpa [#allocation3], 1 }

</bundles_post_ra>
